<compile_context>
chip_gen: v7x
topology: tpu7x:2x2x1
jax: 0.10.0
libtpu: 0.0.40
codegen_flags: <defaults>
</compile_context>

<pallas_src>
import jax
import jax.numpy as jnp
from jax import lax
from jax.experimental import pallas as pl
from jax.experimental.pallas import tpu as pltpu

BN_EPS = 1e-5
_LANE = 128
_MAX_TILE_M = 4096                      # ~10.5 MiB double-buffered at K=576
_VMEM_LIMIT_BYTES = 32 * 1024 * 1024    # >= default on every generation


def _round_up(x, m):
    return (x + m - 1) // m * m


def _cdiv(a, b):
    return -(-a // b)


def _choose_tiling(m):
    """Pad M to a multiple of the tile; >=2 tiles when possible (v7x megacore)."""
    m_pad = _round_up(m, _LANE)
    n_tiles = max(_cdiv(m_pad, _MAX_TILE_M), 1)
    if n_tiles == 1 and m_pad >= 2 * _LANE:
        n_tiles = 2                     # feed both TensorCores on v7x
    tile_m = _round_up(_cdiv(m_pad, n_tiles), _LANE)
    m_pad = n_tiles * tile_m
    return m_pad, tile_m, n_tiles


# ---------------------------------------------------------------------------
# Pallas kernels
# ---------------------------------------------------------------------------
def conv_stats_kernel(p_ref, w_ref, y_ref, st_ref):
    """One lane-dense M-tile: conv matmul + per-channel partial statistics.

    p_ref : (K, tile_m)    bf16 im2col patches (K = 9*Cin, tap-major rows)
    w_ref : (Cout, K)      bf16 conv weights (resident across the grid)
    y_ref : (Cout, tile_m) bf16 raw (pre-BN) conv output tile
    st_ref: (1, Cout, 2)   f32  [:, :, 0] = sum, [:, :, 1] = sum of squares
    """
    acc = jnp.dot(w_ref[...], p_ref[...], preferred_element_type=jnp.float32)
    y_ref[...] = acc.astype(y_ref.dtype)
    # Stats are VPU/XLU filler under the DMA-bound matmul (effectively free).
    st_ref[0, :, 0:1] = jnp.sum(acc, axis=1, keepdims=True)
    st_ref[0, :, 1:2] = jnp.sum(acc * acc, axis=1, keepdims=True)


def head_kernel(f_ref, w_ref, o_ref):
    """Global average pool over the spatial axis + Linear(64 -> classes, no bias).

    f_ref: (C, B, H*W) bf16   w_ref: (num_classes, C) f32   o_ref: (num_classes, B) f32
    """
    pooled = jnp.mean(f_ref[...].astype(jnp.float32), axis=2)          # (C, B)
    o_ref[...] = jnp.dot(w_ref[...], pooled, preferred_element_type=jnp.float32)


# ---------------------------------------------------------------------------
# JAX glue (pure data rearrangement / tiny per-channel math) + per-conv driver
# ---------------------------------------------------------------------------
def _im2col_cmajor(x, stride):
    """x: (Cin, B, H, W) bf16 -> patches (9*Cin, B*Ho*Wo) bf16, plus (Ho, Wo)."""
    cin, b, h, w = x.shape
    xp = jnp.pad(x, ((0, 0), (0, 0), (1, 1), (1, 1)))
    ho = (h + 2 - 3) // stride + 1
    wo = (w + 2 - 3) // stride + 1
    views = []
    for dy in range(3):
        for dx in range(3):
            views.append(xp[:, :, dy:dy + stride * ho:stride,
                             dx:dx + stride * wo:stride])
    patches = jnp.concatenate(views, axis=0).reshape(9 * cin, b * ho * wo)
    return patches, ho, wo


def conv_bn_relu(x, w, gamma, beta, *, stride, residual=None):
    """3x3 conv (pad=1, no bias) + BatchNorm(batch stats) [+ residual] + ReLU.

    x: (Cin, B, H, W) bf16; w: (Cout, Cin, 3, 3) f32;
    returns (Cout, B, Ho, Wo) bf16.
    """
    cin, b = x.shape[0], x.shape[1]
    cout = w.shape[0]

    patches, ho, wo = _im2col_cmajor(x, stride)
    k = 9 * cin
    m = b * ho * wo
    m_pad, tile_m, n_tiles = _choose_tiling(m)
    if m_pad != m:
        # Zero columns -> zero conv output -> contribute 0 to sum/sumsq.
        patches = jnp.pad(patches, ((0, 0), (0, m_pad - m)))

    # (Cout, Cin, 3, 3) -> (Cout, 3, 3, Cin) -> (Cout, 9*Cin): tap-major rows,
    # matching the patch row ordering produced by _im2col_cmajor.
    wmat = jnp.transpose(w, (0, 2, 3, 1)).reshape(cout, k).astype(jnp.bfloat16)

    y_raw, stats = pl.pallas_call(
        conv_stats_kernel,
        out_shape=(
            jax.ShapeDtypeStruct((cout, m_pad), jnp.bfloat16),
            jax.ShapeDtypeStruct((n_tiles, cout, 2), jnp.float32),
        ),
        grid=(n_tiles,),
        in_specs=[
            pl.BlockSpec((k, tile_m), lambda i: (0, i)),
            pl.BlockSpec((cout, k), lambda i: (0, 0)),
        ],
        out_specs=(
            pl.BlockSpec((cout, tile_m), lambda i: (0, i)),
            pl.BlockSpec((1, cout, 2), lambda i: (i, 0, 0)),
        ),
        compiler_params=pltpu.CompilerParams(
            dimension_semantics=("parallel",),
            vmem_limit_bytes=_VMEM_LIMIT_BYTES),
    )(patches, wmat)

    # ---- exact BN batch statistics, folded into per-channel scale/shift (f32)
    total = jnp.sum(stats[:, :, 0], axis=0)                     # (Cout,)
    total_sq = jnp.sum(stats[:, :, 1], axis=0)                  # (Cout,)
    mean = total / m
    var = jnp.maximum(total_sq / m - mean * mean, 0.0)          # biased variance
    scale = gamma.astype(jnp.float32) * lax.rsqrt(var + BN_EPS)
    shift = beta.astype(jnp.float32) - mean * scale

    # ---- BN apply + residual + ReLU: one fused XLA elementwise pass over the
    # bf16 conv output; XLA folds it into the next layer's im2col pad/concat.
    y = y_raw[:, :m].astype(jnp.float32) * scale[:, None] + shift[:, None]
    if residual is not None:
        y = y + residual.reshape(cout, m).astype(jnp.float32)
    act = jnp.maximum(y, 0.0).astype(jnp.bfloat16)
    return act.reshape(cout, b, ho, wo)


def basic_block(x, bp, stride, planes):
    """ResNet BasicBlock (option-A shortcut), channel-major (C, B, H, W) bf16."""
    out = conv_bn_relu(x, bp["conv1_w"], bp["bn1_g"], bp["bn1_b"], stride=stride)
    if stride != 1 or x.shape[0] != planes:
        # Option A: spatial ::2 subsample + zero-pad channels by planes//4 each side.
        sc = x[:, :, ::2, ::2]
        p = planes // 4
        sc = jnp.pad(sc, ((p, p), (0, 0), (0, 0), (0, 0)))
    else:
        sc = x
    out = conv_bn_relu(out, bp["conv2_w"], bp["bn2_g"], bp["bn2_b"],
                       stride=1, residual=sc)
    return out


def head(feat, linear_w):
    """F.avg_pool2d over the full map + Linear(64, num_classes, bias=False)."""
    c, b, h, w = feat.shape
    f = feat.reshape(c, b, h * w)
    num_classes = linear_w.shape[0]
    vmem = pl.BlockSpec(memory_space=pltpu.MemorySpace.VMEM)
    logits_t = pl.pallas_call(
        head_kernel,
        out_shape=jax.ShapeDtypeStruct((num_classes, b), jnp.float32),
        in_specs=[vmem, vmem],
        out_specs=vmem,
    )(f, linear_w.astype(jnp.float32))
    return jnp.transpose(logits_t)                           # (B, num_classes)


def forward(params, x_nchw):
    """BottomModelForCifar10.forward: x (NCHW) -> logits (B, 10)."""
    # NCHW -> channel-major (C, B, H, W) bf16: the big B*H*W axis maps to lanes.
    x = jnp.transpose(x_nchw, (1, 0, 2, 3)).astype(jnp.bfloat16)
    out = conv_bn_relu(x, params["conv1_w"], params["bn1_g"], params["bn1_b"],
                       stride=1)
    for li, (planes, first_stride) in enumerate([(16, 1), (32, 2), (64, 2)]):
        for bi in range(3):
            stride = first_stride if bi == 0 else 1
            out = basic_block(out, params["layers"][li][bi], stride, planes)
    return head(out, params["linear_w"])


# ---------------------------------------------------------------------------
# Deterministic parameter initialization (shapes from the PyTorch __init__)
# ---------------------------------------------------------------------------
def _kaiming(key, shape, fan_in):
    # kaiming_normal_ default: gain=sqrt(2), fan_in mode.
    return jax.random.normal(key, shape, dtype=jnp.float32) * jnp.sqrt(2.0 / fan_in)


def init_params(key):
    keys = iter(jax.random.split(key, 32))
    p = {
        "conv1_w": _kaiming(next(keys), (16, 3, 3, 3), 3 * 3 * 3),
        "bn1_g": jnp.ones((16,), jnp.float32),
        "bn1_b": jnp.zeros((16,), jnp.float32),
        "layers": [],
    }
    in_planes = 16
    for planes, _ in [(16, 1), (32, 2), (64, 2)]:
        blocks = []
        for _ in range(3):
            bp = {
                "conv1_w": _kaiming(next(keys), (planes, in_planes, 3, 3), in_planes * 9),
                "bn1_g": jnp.ones((planes,), jnp.float32),
                "bn1_b": jnp.zeros((planes,), jnp.float32),
                "conv2_w": _kaiming(next(keys), (planes, planes, 3, 3), planes * 9),
                "bn2_g": jnp.ones((planes,), jnp.float32),
                "bn2_b": jnp.zeros((planes,), jnp.float32),
            }
            blocks.append(bp)
            in_planes = planes
        p["layers"].append(blocks)
    p["linear_w"] = _kaiming(next(keys), (10, 64), 64)
    return p


# ---------------------------------------------------------------------------
if __name__ == "__main__":
    key = jax.random.PRNGKey(0)
    pkey, xkey = jax.random.split(key)
    params = init_params(pkey)
    # Small CIFAR-like input (NCHW, as PyTorch would receive it).
    x = jax.random.normal(xkey, (2, 3, 16, 16), dtype=jnp.float32)

    logits = jax.jit(forward)(params, x)
    jax.block_until_ready(logits)
    assert logits.shape == (2, 10), logits.shape
    assert bool(jnp.all(jnp.isfinite(logits)))
    print("KERNEL_OK")
</pallas_src>

<mosaic_0001>
module attributes {stable_mosaic.version = 11 : i64} {
  func.func @conv_stats_kernel(%arg0: i32, %arg1: memref<27x256xbf16, #tpu.memory_space<vmem>>, %arg2: memref<16x27xbf16, #tpu.memory_space<vmem>>, %arg3: memref<16x256xbf16, #tpu.memory_space<vmem>>, %arg4: memref<1x16x2xf32, #tpu.memory_space<vmem>>) attributes {dimension_semantics = [#tpu.dimension_semantics<parallel>], iteration_bounds = array<i64: 2>, scalar_prefetch = 0 : i64, scratch_operands = 0 : i64, tpu.core_type = #tpu.core_type<tc>, window_params = [{transform_indices = @transform_0, window_bounds = array<i64: 27, 256>}, {pipeline_mode = #tpu.pipeline_mode<synchronous>, transform_indices = @transform_1, window_bounds = array<i64: 16, 27>}, {transform_indices = @transform_2, window_bounds = array<i64: 16, 256>}, {transform_indices = @transform_3, window_bounds = array<i64: 1, 16, 2>}]} {
    %c0 = arith.constant 0 : index
    %c0_0 = arith.constant 0 : index
    %0 = vector.load %arg2[%c0, %c0_0] : memref<16x27xbf16, #tpu.memory_space<vmem>>, vector<16x27xbf16>
    %c0_1 = arith.constant 0 : index
    %c0_2 = arith.constant 0 : index
    %1 = vector.load %arg1[%c0_1, %c0_2] : memref<27x256xbf16, #tpu.memory_space<vmem>>, vector<27x256xbf16>
    %cst = arith.constant dense<0.000000e+00> : vector<16x256xf32>
    %2 = tpu.matmul %0, %1, %cst {dimension_numbers = #tpu.dot_dimension_numbers<[1], [0], [0], [1], [0, 0, 1, 1], [], []>} : vector<16x27xbf16>, vector<27x256xbf16>, vector<16x256xf32> -> vector<16x256xf32>
    %3 = arith.truncf %2 : vector<16x256xf32> to vector<16x256xbf16>
    %c0_3 = arith.constant 0 : index
    %c0_4 = arith.constant 0 : index
    %4 = vector.load %arg3[%c0_3, %c0_4] : memref<16x256xbf16, #tpu.memory_space<vmem>>, vector<16x256xbf16>
    tpu.vector_store %arg3[%c0_3, %c0_4], %3 {strides = array<i32>} : memref<16x256xbf16, #tpu.memory_space<vmem>>, vector<16x256xbf16>,
    %cst_5 = arith.constant dense<0.000000e+00> : vector<16xf32>
    %5 = vector.multi_reduction <add>, %2, %cst_5 [1] : vector<16x256xf32> to vector<16xf32>
    %6 = vector.shape_cast %5 : vector<16xf32> to vector<16x1xf32>
    %c0_6 = arith.constant 0 : index
    %c0_7 = arith.constant 0 : index
    %c0_8 = arith.constant 0 : index
    %7 = vector.load %arg4[%c0_6, %c0_7, %c0_8] : memref<1x16x2xf32, #tpu.memory_space<vmem>>, vector<1x16x1xf32>
    %8 = vector.shape_cast %7 : vector<1x16x1xf32> to vector<16x1xf32>
    %9 = vector.shape_cast %6 : vector<16x1xf32> to vector<1x16x1xf32>
    tpu.vector_store %arg4[%c0_6, %c0_7, %c0_8], %9 {strides = array<i32>} : memref<1x16x2xf32, #tpu.memory_space<vmem>>, vector<1x16x1xf32>,
    %10 = arith.mulf %2, %2 : vector<16x256xf32>
    %cst_9 = arith.constant dense<0.000000e+00> : vector<16xf32>
    %11 = vector.multi_reduction <add>, %10, %cst_9 [1] : vector<16x256xf32> to vector<16xf32>
    %12 = vector.shape_cast %11 : vector<16xf32> to vector<16x1xf32>
    %c0_10 = arith.constant 0 : index
    %c0_11 = arith.constant 0 : index
    %c1 = arith.constant 1 : index
    %13 = vector.load %arg4[%c0_10, %c0_11, %c1] : memref<1x16x2xf32, #tpu.memory_space<vmem>>, vector<1x16x1xf32>
    %14 = vector.shape_cast %13 : vector<1x16x1xf32> to vector<16x1xf32>
    %15 = vector.shape_cast %12 : vector<16x1xf32> to vector<1x16x1xf32>
    tpu.vector_store %arg4[%c0_10, %c0_11, %c1], %15 {strides = array<i32>} : memref<1x16x2xf32, #tpu.memory_space<vmem>>, vector<1x16x1xf32>,
    return
  }
  func.func @transform_0(%arg0: i32) -> (i32, i32) {
    %c0_i32 = arith.constant 0 : i32
    %c0_i32_0 = arith.constant 0 : i32
    return %c0_i32, %arg0 : i32, i32
  }
  func.func @transform_1(%arg0: i32) -> (i32, i32) {
    %c0_i32 = arith.constant 0 : i32
    %c0_i32_0 = arith.constant 0 : i32
    %c0_i32_1 = arith.constant 0 : i32
    return %c0_i32, %c0_i32_0 : i32, i32
  }
  func.func @transform_2(%arg0: i32) -> (i32, i32) {
    %c0_i32 = arith.constant 0 : i32
    %c0_i32_0 = arith.constant 0 : i32
    return %c0_i32, %arg0 : i32, i32
  }
  func.func @transform_3(%arg0: i32) -> (i32, i32, i32) {
    %c0_i32 = arith.constant 0 : i32
    %c0_i32_0 = arith.constant 0 : i32
    %c0_i32_1 = arith.constant 0 : i32
    return %arg0, %c0_i32, %c0_i32_0 : i32, i32, i32
  }
}

module attributes {stable_mosaic.version = 11 : i64} {
  func.func @conv_stats_kernel(%arg0: i32, %arg1: memref<144x256xbf16, #tpu.memory_space<vmem>>, %arg2: memref<16x144xbf16, #tpu.memory_space<vmem>>, %arg3: memref<16x256xbf16, #tpu.memory_space<vmem>>, %arg4: memref<1x16x2xf32, #tpu.memory_space<vmem>>) attributes {dimension_semantics = [#tpu.dimension_semantics<parallel>], iteration_bounds = array<i64: 2>, scalar_prefetch = 0 : i64, scratch_operands = 0 : i64, tpu.core_type = #tpu.core_type<tc>, window_params = [{transform_indices = @transform_0, window_bounds = array<i64: 144, 256>}, {pipeline_mode = #tpu.pipeline_mode<synchronous>, transform_indices = @transform_1, window_bounds = array<i64: 16, 144>}, {transform_indices = @transform_2, window_bounds = array<i64: 16, 256>}, {transform_indices = @transform_3, window_bounds = array<i64: 1, 16, 2>}]} {
    %c0 = arith.constant 0 : index
    %c0_0 = arith.constant 0 : index
    %0 = vector.load %arg2[%c0, %c0_0] : memref<16x144xbf16, #tpu.memory_space<vmem>>, vector<16x144xbf16>
    %c0_1 = arith.constant 0 : index
    %c0_2 = arith.constant 0 : index
    %1 = vector.load %arg1[%c0_1, %c0_2] : memref<144x256xbf16, #tpu.memory_space<vmem>>, vector<144x256xbf16>
    %cst = arith.constant dense<0.000000e+00> : vector<16x256xf32>
    %2 = tpu.matmul %0, %1, %cst {dimension_numbers = #tpu.dot_dimension_numbers<[1], [0], [0], [1], [0, 0, 1, 1], [], []>} : vector<16x144xbf16>, vector<144x256xbf16>, vector<16x256xf32> -> vector<16x256xf32>
    %3 = arith.truncf %2 : vector<16x256xf32> to vector<16x256xbf16>
    %c0_3 = arith.constant 0 : index
    %c0_4 = arith.constant 0 : index
    %4 = vector.load %arg3[%c0_3, %c0_4] : memref<16x256xbf16, #tpu.memory_space<vmem>>, vector<16x256xbf16>
    tpu.vector_store %arg3[%c0_3, %c0_4], %3 {strides = array<i32>} : memref<16x256xbf16, #tpu.memory_space<vmem>>, vector<16x256xbf16>,
    %cst_5 = arith.constant dense<0.000000e+00> : vector<16xf32>
    %5 = vector.multi_reduction <add>, %2, %cst_5 [1] : vector<16x256xf32> to vector<16xf32>
    %6 = vector.shape_cast %5 : vector<16xf32> to vector<16x1xf32>
    %c0_6 = arith.constant 0 : index
    %c0_7 = arith.constant 0 : index
    %c0_8 = arith.constant 0 : index
    %7 = vector.load %arg4[%c0_6, %c0_7, %c0_8] : memref<1x16x2xf32, #tpu.memory_space<vmem>>, vector<1x16x1xf32>
    %8 = vector.shape_cast %7 : vector<1x16x1xf32> to vector<16x1xf32>
    %9 = vector.shape_cast %6 : vector<16x1xf32> to vector<1x16x1xf32>
    tpu.vector_store %arg4[%c0_6, %c0_7, %c0_8], %9 {strides = array<i32>} : memref<1x16x2xf32, #tpu.memory_space<vmem>>, vector<1x16x1xf32>,
    %10 = arith.mulf %2, %2 : vector<16x256xf32>
    %cst_9 = arith.constant dense<0.000000e+00> : vector<16xf32>
    %11 = vector.multi_reduction <add>, %10, %cst_9 [1] : vector<16x256xf32> to vector<16xf32>
    %12 = vector.shape_cast %11 : vector<16xf32> to vector<16x1xf32>
    %c0_10 = arith.constant 0 : index
    %c0_11 = arith.constant 0 : index
    %c1 = arith.constant 1 : index
    %13 = vector.load %arg4[%c0_10, %c0_11, %c1] : memref<1x16x2xf32, #tpu.memory_space<vmem>>, vector<1x16x1xf32>
    %14 = vector.shape_cast %13 : vector<1x16x1xf32> to vector<16x1xf32>
    %15 = vector.shape_cast %12 : vector<16x1xf32> to vector<1x16x1xf32>
    tpu.vector_store %arg4[%c0_10, %c0_11, %c1], %15 {strides = array<i32>} : memref<1x16x2xf32, #tpu.memory_space<vmem>>, vector<1x16x1xf32>,
    return
  }
  func.func @transform_0(%arg0: i32) -> (i32, i32) {
    %c0_i32 = arith.constant 0 : i32
    %c0_i32_0 = arith.constant 0 : i32
    return %c0_i32, %arg0 : i32, i32
  }
  func.func @transform_1(%arg0: i32) -> (i32, i32) {
    %c0_i32 = arith.constant 0 : i32
    %c0_i32_0 = arith.constant 0 : i32
    %c0_i32_1 = arith.constant 0 : i32
    return %c0_i32, %c0_i32_0 : i32, i32
  }
  func.func @transform_2(%arg0: i32) -> (i32, i32) {
    %c0_i32 = arith.constant 0 : i32
    %c0_i32_0 = arith.constant 0 : i32
    return %c0_i32, %arg0 : i32, i32
  }
  func.func @transform_3(%arg0: i32) -> (i32, i32, i32) {
    %c0_i32 = arith.constant 0 : i32
    %c0_i32_0 = arith.constant 0 : i32
    %c0_i32_1 = arith.constant 0 : i32
    return %arg0, %c0_i32, %c0_i32_0 : i32, i32, i32
  }
}

module attributes {stable_mosaic.version = 11 : i64} {
  func.func @conv_stats_kernel(%arg0: i32, %arg1: memref<144x128xbf16, #tpu.memory_space<vmem>>, %arg2: memref<32x144xbf16, #tpu.memory_space<vmem>>, %arg3: memref<32x128xbf16, #tpu.memory_space<vmem>>, %arg4: memref<1x32x2xf32, #tpu.memory_space<vmem>>) attributes {dimension_semantics = [#tpu.dimension_semantics<parallel>], iteration_bounds = array<i64: 1>, scalar_prefetch = 0 : i64, scratch_operands = 0 : i64, tpu.core_type = #tpu.core_type<tc>, window_params = [{transform_indices = @transform_0, window_bounds = array<i64: 144, 128>}, {pipeline_mode = #tpu.pipeline_mode<synchronous>, transform_indices = @transform_1, window_bounds = array<i64: 32, 144>}, {transform_indices = @transform_2, window_bounds = array<i64: 32, 128>}, {transform_indices = @transform_3, window_bounds = array<i64: 1, 32, 2>}]} {
    %c0 = arith.constant 0 : index
    %c0_0 = arith.constant 0 : index
    %0 = vector.load %arg2[%c0, %c0_0] : memref<32x144xbf16, #tpu.memory_space<vmem>>, vector<32x144xbf16>
    %c0_1 = arith.constant 0 : index
    %c0_2 = arith.constant 0 : index
    %1 = vector.load %arg1[%c0_1, %c0_2] : memref<144x128xbf16, #tpu.memory_space<vmem>>, vector<144x128xbf16>
    %cst = arith.constant dense<0.000000e+00> : vector<32x128xf32>
    %2 = tpu.matmul %0, %1, %cst {dimension_numbers = #tpu.dot_dimension_numbers<[1], [0], [0], [1], [0, 0, 1, 1], [], []>} : vector<32x144xbf16>, vector<144x128xbf16>, vector<32x128xf32> -> vector<32x128xf32>
    %3 = arith.truncf %2 : vector<32x128xf32> to vector<32x128xbf16>
    %c0_3 = arith.constant 0 : index
    %c0_4 = arith.constant 0 : index
    %4 = vector.load %arg3[%c0_3, %c0_4] : memref<32x128xbf16, #tpu.memory_space<vmem>>, vector<32x128xbf16>
    tpu.vector_store %arg3[%c0_3, %c0_4], %3 {strides = array<i32>} : memref<32x128xbf16, #tpu.memory_space<vmem>>, vector<32x128xbf16>,
    %cst_5 = arith.constant dense<0.000000e+00> : vector<32xf32>
    %5 = vector.multi_reduction <add>, %2, %cst_5 [1] : vector<32x128xf32> to vector<32xf32>
    %6 = vector.shape_cast %5 : vector<32xf32> to vector<32x1xf32>
    %c0_6 = arith.constant 0 : index
    %c0_7 = arith.constant 0 : index
    %c0_8 = arith.constant 0 : index
    %7 = vector.load %arg4[%c0_6, %c0_7, %c0_8] : memref<1x32x2xf32, #tpu.memory_space<vmem>>, vector<1x32x1xf32>
    %8 = vector.shape_cast %7 : vector<1x32x1xf32> to vector<32x1xf32>
    %9 = vector.shape_cast %6 : vector<32x1xf32> to vector<1x32x1xf32>
    tpu.vector_store %arg4[%c0_6, %c0_7, %c0_8], %9 {strides = array<i32>} : memref<1x32x2xf32, #tpu.memory_space<vmem>>, vector<1x32x1xf32>,
    %10 = arith.mulf %2, %2 : vector<32x128xf32>
    %cst_9 = arith.constant dense<0.000000e+00> : vector<32xf32>
    %11 = vector.multi_reduction <add>, %10, %cst_9 [1] : vector<32x128xf32> to vector<32xf32>
    %12 = vector.shape_cast %11 : vector<32xf32> to vector<32x1xf32>
    %c0_10 = arith.constant 0 : index
    %c0_11 = arith.constant 0 : index
    %c1 = arith.constant 1 : index
    %13 = vector.load %arg4[%c0_10, %c0_11, %c1] : memref<1x32x2xf32, #tpu.memory_space<vmem>>, vector<1x32x1xf32>
    %14 = vector.shape_cast %13 : vector<1x32x1xf32> to vector<32x1xf32>
    %15 = vector.shape_cast %12 : vector<32x1xf32> to vector<1x32x1xf32>
    tpu.vector_store %arg4[%c0_10, %c0_11, %c1], %15 {strides = array<i32>} : memref<1x32x2xf32, #tpu.memory_space<vmem>>, vector<1x32x1xf32>,
    return
  }
  func.func @transform_0(%arg0: i32) -> (i32, i32) {
    %c0_i32 = arith.constant 0 : i32
    %c0_i32_0 = arith.constant 0 : i32
    return %c0_i32, %arg0 : i32, i32
  }
  func.func @transform_1(%arg0: i32) -> (i32, i32) {
    %c0_i32 = arith.constant 0 : i32
    %c0_i32_0 = arith.constant 0 : i32
    %c0_i32_1 = arith.constant 0 : i32
    return %c0_i32, %c0_i32_0 : i32, i32
  }
  func.func @transform_2(%arg0: i32) -> (i32, i32) {
    %c0_i32 = arith.constant 0 : i32
    %c0_i32_0 = arith.constant 0 : i32
    return %c0_i32, %arg0 : i32, i32
  }
  func.func @transform_3(%arg0: i32) -> (i32, i32, i32) {
    %c0_i32 = arith.constant 0 : i32
    %c0_i32_0 = arith.constant 0 : i32
    %c0_i32_1 = arith.constant 0 : i32
    return %arg0, %c0_i32, %c0_i32_0 : i32, i32, i32
  }
}

module attributes {stable_mosaic.version = 11 : i64} {
  func.func @conv_stats_kernel(%arg0: i32, %arg1: memref<288x128xbf16, #tpu.memory_space<vmem>>, %arg2: memref<32x288xbf16, #tpu.memory_space<vmem>>, %arg3: memref<32x128xbf16, #tpu.memory_space<vmem>>, %arg4: memref<1x32x2xf32, #tpu.memory_space<vmem>>) attributes {dimension_semantics = [#tpu.dimension_semantics<parallel>], iteration_bounds = array<i64: 1>, scalar_prefetch = 0 : i64, scratch_operands = 0 : i64, tpu.core_type = #tpu.core_type<tc>, window_params = [{transform_indices = @transform_0, window_bounds = array<i64: 288, 128>}, {pipeline_mode = #tpu.pipeline_mode<synchronous>, transform_indices = @transform_1, window_bounds = array<i64: 32, 288>}, {transform_indices = @transform_2, window_bounds = array<i64: 32, 128>}, {transform_indices = @transform_3, window_bounds = array<i64: 1, 32, 2>}]} {
    %c0 = arith.constant 0 : index
    %c0_0 = arith.constant 0 : index
    %0 = vector.load %arg2[%c0, %c0_0] : memref<32x288xbf16, #tpu.memory_space<vmem>>, vector<32x288xbf16>
    %c0_1 = arith.constant 0 : index
    %c0_2 = arith.constant 0 : index
    %1 = vector.load %arg1[%c0_1, %c0_2] : memref<288x128xbf16, #tpu.memory_space<vmem>>, vector<288x128xbf16>
    %cst = arith.constant dense<0.000000e+00> : vector<32x128xf32>
    %2 = tpu.matmul %0, %1, %cst {dimension_numbers = #tpu.dot_dimension_numbers<[1], [0], [0], [1], [0, 0, 1, 1], [], []>} : vector<32x288xbf16>, vector<288x128xbf16>, vector<32x128xf32> -> vector<32x128xf32>
    %3 = arith.truncf %2 : vector<32x128xf32> to vector<32x128xbf16>
    %c0_3 = arith.constant 0 : index
    %c0_4 = arith.constant 0 : index
    %4 = vector.load %arg3[%c0_3, %c0_4] : memref<32x128xbf16, #tpu.memory_space<vmem>>, vector<32x128xbf16>
    tpu.vector_store %arg3[%c0_3, %c0_4], %3 {strides = array<i32>} : memref<32x128xbf16, #tpu.memory_space<vmem>>, vector<32x128xbf16>,
    %cst_5 = arith.constant dense<0.000000e+00> : vector<32xf32>
    %5 = vector.multi_reduction <add>, %2, %cst_5 [1] : vector<32x128xf32> to vector<32xf32>
    %6 = vector.shape_cast %5 : vector<32xf32> to vector<32x1xf32>
    %c0_6 = arith.constant 0 : index
    %c0_7 = arith.constant 0 : index
    %c0_8 = arith.constant 0 : index
    %7 = vector.load %arg4[%c0_6, %c0_7, %c0_8] : memref<1x32x2xf32, #tpu.memory_space<vmem>>, vector<1x32x1xf32>
    %8 = vector.shape_cast %7 : vector<1x32x1xf32> to vector<32x1xf32>
    %9 = vector.shape_cast %6 : vector<32x1xf32> to vector<1x32x1xf32>
    tpu.vector_store %arg4[%c0_6, %c0_7, %c0_8], %9 {strides = array<i32>} : memref<1x32x2xf32, #tpu.memory_space<vmem>>, vector<1x32x1xf32>,
    %10 = arith.mulf %2, %2 : vector<32x128xf32>
    %cst_9 = arith.constant dense<0.000000e+00> : vector<32xf32>
    %11 = vector.multi_reduction <add>, %10, %cst_9 [1] : vector<32x128xf32> to vector<32xf32>
    %12 = vector.shape_cast %11 : vector<32xf32> to vector<32x1xf32>
    %c0_10 = arith.constant 0 : index
    %c0_11 = arith.constant 0 : index
    %c1 = arith.constant 1 : index
    %13 = vector.load %arg4[%c0_10, %c0_11, %c1] : memref<1x32x2xf32, #tpu.memory_space<vmem>>, vector<1x32x1xf32>
    %14 = vector.shape_cast %13 : vector<1x32x1xf32> to vector<32x1xf32>
    %15 = vector.shape_cast %12 : vector<32x1xf32> to vector<1x32x1xf32>
    tpu.vector_store %arg4[%c0_10, %c0_11, %c1], %15 {strides = array<i32>} : memref<1x32x2xf32, #tpu.memory_space<vmem>>, vector<1x32x1xf32>,
    return
  }
  func.func @transform_0(%arg0: i32) -> (i32, i32) {
    %c0_i32 = arith.constant 0 : i32
    %c0_i32_0 = arith.constant 0 : i32
    return %c0_i32, %arg0 : i32, i32
  }
  func.func @transform_1(%arg0: i32) -> (i32, i32) {
    %c0_i32 = arith.constant 0 : i32
    %c0_i32_0 = arith.constant 0 : i32
    %c0_i32_1 = arith.constant 0 : i32
    return %c0_i32, %c0_i32_0 : i32, i32
  }
  func.func @transform_2(%arg0: i32) -> (i32, i32) {
    %c0_i32 = arith.constant 0 : i32
    %c0_i32_0 = arith.constant 0 : i32
    return %c0_i32, %arg0 : i32, i32
  }
  func.func @transform_3(%arg0: i32) -> (i32, i32, i32) {
    %c0_i32 = arith.constant 0 : i32
    %c0_i32_0 = arith.constant 0 : i32
    %c0_i32_1 = arith.constant 0 : i32
    return %arg0, %c0_i32, %c0_i32_0 : i32, i32, i32
  }
}

module attributes {stable_mosaic.version = 11 : i64} {
  func.func @conv_stats_kernel(%arg0: i32, %arg1: memref<288x128xbf16, #tpu.memory_space<vmem>>, %arg2: memref<64x288xbf16, #tpu.memory_space<vmem>>, %arg3: memref<64x128xbf16, #tpu.memory_space<vmem>>, %arg4: memref<1x64x2xf32, #tpu.memory_space<vmem>>) attributes {dimension_semantics = [#tpu.dimension_semantics<parallel>], iteration_bounds = array<i64: 1>, scalar_prefetch = 0 : i64, scratch_operands = 0 : i64, tpu.core_type = #tpu.core_type<tc>, window_params = [{transform_indices = @transform_0, window_bounds = array<i64: 288, 128>}, {pipeline_mode = #tpu.pipeline_mode<synchronous>, transform_indices = @transform_1, window_bounds = array<i64: 64, 288>}, {transform_indices = @transform_2, window_bounds = array<i64: 64, 128>}, {transform_indices = @transform_3, window_bounds = array<i64: 1, 64, 2>}]} {
    %c0 = arith.constant 0 : index
    %c0_0 = arith.constant 0 : index
    %0 = vector.load %arg2[%c0, %c0_0] : memref<64x288xbf16, #tpu.memory_space<vmem>>, vector<64x288xbf16>
    %c0_1 = arith.constant 0 : index
    %c0_2 = arith.constant 0 : index
    %1 = vector.load %arg1[%c0_1, %c0_2] : memref<288x128xbf16, #tpu.memory_space<vmem>>, vector<288x128xbf16>
    %cst = arith.constant dense<0.000000e+00> : vector<64x128xf32>
    %2 = tpu.matmul %0, %1, %cst {dimension_numbers = #tpu.dot_dimension_numbers<[1], [0], [0], [1], [0, 0, 1, 1], [], []>} : vector<64x288xbf16>, vector<288x128xbf16>, vector<64x128xf32> -> vector<64x128xf32>
    %3 = arith.truncf %2 : vector<64x128xf32> to vector<64x128xbf16>
    %c0_3 = arith.constant 0 : index
    %c0_4 = arith.constant 0 : index
    %4 = vector.load %arg3[%c0_3, %c0_4] : memref<64x128xbf16, #tpu.memory_space<vmem>>, vector<64x128xbf16>
    tpu.vector_store %arg3[%c0_3, %c0_4], %3 {strides = array<i32>} : memref<64x128xbf16, #tpu.memory_space<vmem>>, vector<64x128xbf16>,
    %cst_5 = arith.constant dense<0.000000e+00> : vector<64xf32>
    %5 = vector.multi_reduction <add>, %2, %cst_5 [1] : vector<64x128xf32> to vector<64xf32>
    %6 = vector.shape_cast %5 : vector<64xf32> to vector<64x1xf32>
    %c0_6 = arith.constant 0 : index
    %c0_7 = arith.constant 0 : index
    %c0_8 = arith.constant 0 : index
    %7 = vector.load %arg4[%c0_6, %c0_7, %c0_8] : memref<1x64x2xf32, #tpu.memory_space<vmem>>, vector<1x64x1xf32>
    %8 = vector.shape_cast %7 : vector<1x64x1xf32> to vector<64x1xf32>
    %9 = vector.shape_cast %6 : vector<64x1xf32> to vector<1x64x1xf32>
    tpu.vector_store %arg4[%c0_6, %c0_7, %c0_8], %9 {strides = array<i32>} : memref<1x64x2xf32, #tpu.memory_space<vmem>>, vector<1x64x1xf32>,
    %10 = arith.mulf %2, %2 : vector<64x128xf32>
    %cst_9 = arith.constant dense<0.000000e+00> : vector<64xf32>
    %11 = vector.multi_reduction <add>, %10, %cst_9 [1] : vector<64x128xf32> to vector<64xf32>
    %12 = vector.shape_cast %11 : vector<64xf32> to vector<64x1xf32>
    %c0_10 = arith.constant 0 : index
    %c0_11 = arith.constant 0 : index
    %c1 = arith.constant 1 : index
    %13 = vector.load %arg4[%c0_10, %c0_11, %c1] : memref<1x64x2xf32, #tpu.memory_space<vmem>>, vector<1x64x1xf32>
    %14 = vector.shape_cast %13 : vector<1x64x1xf32> to vector<64x1xf32>
    %15 = vector.shape_cast %12 : vector<64x1xf32> to vector<1x64x1xf32>
    tpu.vector_store %arg4[%c0_10, %c0_11, %c1], %15 {strides = array<i32>} : memref<1x64x2xf32, #tpu.memory_space<vmem>>, vector<1x64x1xf32>,
    return
  }
  func.func @transform_0(%arg0: i32) -> (i32, i32) {
    %c0_i32 = arith.constant 0 : i32
    %c0_i32_0 = arith.constant 0 : i32
    return %c0_i32, %arg0 : i32, i32
  }
  func.func @transform_1(%arg0: i32) -> (i32, i32) {
    %c0_i32 = arith.constant 0 : i32
    %c0_i32_0 = arith.constant 0 : i32
    %c0_i32_1 = arith.constant 0 : i32
    return %c0_i32, %c0_i32_0 : i32, i32
  }
  func.func @transform_2(%arg0: i32) -> (i32, i32) {
    %c0_i32 = arith.constant 0 : i32
    %c0_i32_0 = arith.constant 0 : i32
    return %c0_i32, %arg0 : i32, i32
  }
  func.func @transform_3(%arg0: i32) -> (i32, i32, i32) {
    %c0_i32 = arith.constant 0 : i32
    %c0_i32_0 = arith.constant 0 : i32
    %c0_i32_1 = arith.constant 0 : i32
    return %arg0, %c0_i32, %c0_i32_0 : i32, i32, i32
  }
}

module attributes {stable_mosaic.version = 11 : i64} {
  func.func @conv_stats_kernel(%arg0: i32, %arg1: memref<576x128xbf16, #tpu.memory_space<vmem>>, %arg2: memref<64x576xbf16, #tpu.memory_space<vmem>>, %arg3: memref<64x128xbf16, #tpu.memory_space<vmem>>, %arg4: memref<1x64x2xf32, #tpu.memory_space<vmem>>) attributes {dimension_semantics = [#tpu.dimension_semantics<parallel>], iteration_bounds = array<i64: 1>, scalar_prefetch = 0 : i64, scratch_operands = 0 : i64, tpu.core_type = #tpu.core_type<tc>, window_params = [{transform_indices = @transform_0, window_bounds = array<i64: 576, 128>}, {pipeline_mode = #tpu.pipeline_mode<synchronous>, transform_indices = @transform_1, window_bounds = array<i64: 64, 576>}, {transform_indices = @transform_2, window_bounds = array<i64: 64, 128>}, {transform_indices = @transform_3, window_bounds = array<i64: 1, 64, 2>}]} {
    %c0 = arith.constant 0 : index
    %c0_0 = arith.constant 0 : index
    %0 = vector.load %arg2[%c0, %c0_0] : memref<64x576xbf16, #tpu.memory_space<vmem>>, vector<64x576xbf16>
    %c0_1 = arith.constant 0 : index
    %c0_2 = arith.constant 0 : index
    %1 = vector.load %arg1[%c0_1, %c0_2] : memref<576x128xbf16, #tpu.memory_space<vmem>>, vector<576x128xbf16>
    %cst = arith.constant dense<0.000000e+00> : vector<64x128xf32>
    %2 = tpu.matmul %0, %1, %cst {dimension_numbers = #tpu.dot_dimension_numbers<[1], [0], [0], [1], [0, 0, 1, 1], [], []>} : vector<64x576xbf16>, vector<576x128xbf16>, vector<64x128xf32> -> vector<64x128xf32>
    %3 = arith.truncf %2 : vector<64x128xf32> to vector<64x128xbf16>
    %c0_3 = arith.constant 0 : index
    %c0_4 = arith.constant 0 : index
    %4 = vector.load %arg3[%c0_3, %c0_4] : memref<64x128xbf16, #tpu.memory_space<vmem>>, vector<64x128xbf16>
    tpu.vector_store %arg3[%c0_3, %c0_4], %3 {strides = array<i32>} : memref<64x128xbf16, #tpu.memory_space<vmem>>, vector<64x128xbf16>,
    %cst_5 = arith.constant dense<0.000000e+00> : vector<64xf32>
    %5 = vector.multi_reduction <add>, %2, %cst_5 [1] : vector<64x128xf32> to vector<64xf32>
    %6 = vector.shape_cast %5 : vector<64xf32> to vector<64x1xf32>
    %c0_6 = arith.constant 0 : index
    %c0_7 = arith.constant 0 : index
    %c0_8 = arith.constant 0 : index
    %7 = vector.load %arg4[%c0_6, %c0_7, %c0_8] : memref<1x64x2xf32, #tpu.memory_space<vmem>>, vector<1x64x1xf32>
    %8 = vector.shape_cast %7 : vector<1x64x1xf32> to vector<64x1xf32>
    %9 = vector.shape_cast %6 : vector<64x1xf32> to vector<1x64x1xf32>
    tpu.vector_store %arg4[%c0_6, %c0_7, %c0_8], %9 {strides = array<i32>} : memref<1x64x2xf32, #tpu.memory_space<vmem>>, vector<1x64x1xf32>,
    %10 = arith.mulf %2, %2 : vector<64x128xf32>
    %cst_9 = arith.constant dense<0.000000e+00> : vector<64xf32>
    %11 = vector.multi_reduction <add>, %10, %cst_9 [1] : vector<64x128xf32> to vector<64xf32>
    %12 = vector.shape_cast %11 : vector<64xf32> to vector<64x1xf32>
    %c0_10 = arith.constant 0 : index
    %c0_11 = arith.constant 0 : index
    %c1 = arith.constant 1 : index
    %13 = vector.load %arg4[%c0_10, %c0_11, %c1] : memref<1x64x2xf32, #tpu.memory_space<vmem>>, vector<1x64x1xf32>
    %14 = vector.shape_cast %13 : vector<1x64x1xf32> to vector<64x1xf32>
    %15 = vector.shape_cast %12 : vector<64x1xf32> to vector<1x64x1xf32>
    tpu.vector_store %arg4[%c0_10, %c0_11, %c1], %15 {strides = array<i32>} : memref<1x64x2xf32, #tpu.memory_space<vmem>>, vector<1x64x1xf32>,
    return
  }
  func.func @transform_0(%arg0: i32) -> (i32, i32) {
    %c0_i32 = arith.constant 0 : i32
    %c0_i32_0 = arith.constant 0 : i32
    return %c0_i32, %arg0 : i32, i32
  }
  func.func @transform_1(%arg0: i32) -> (i32, i32) {
    %c0_i32 = arith.constant 0 : i32
    %c0_i32_0 = arith.constant 0 : i32
    %c0_i32_1 = arith.constant 0 : i32
    return %c0_i32, %c0_i32_0 : i32, i32
  }
  func.func @transform_2(%arg0: i32) -> (i32, i32) {
    %c0_i32 = arith.constant 0 : i32
    %c0_i32_0 = arith.constant 0 : i32
    return %c0_i32, %arg0 : i32, i32
  }
  func.func @transform_3(%arg0: i32) -> (i32, i32, i32) {
    %c0_i32 = arith.constant 0 : i32
    %c0_i32_0 = arith.constant 0 : i32
    %c0_i32_1 = arith.constant 0 : i32
    return %arg0, %c0_i32, %c0_i32_0 : i32, i32, i32
  }
}

module attributes {stable_mosaic.version = 11 : i64} {
  func.func @head_kernel(%arg0: memref<64x2x16xbf16, #tpu.memory_space<vmem>>, %arg1: memref<10x64xf32, #tpu.memory_space<vmem>>, %arg2: memref<10x2xf32, #tpu.memory_space<vmem>>) attributes {dimension_semantics = [], scalar_prefetch = 0 : i64, scratch_operands = 0 : i64, tpu.core_type = #tpu.core_type<tc>} {
    %c0 = arith.constant 0 : index
    %c0_0 = arith.constant 0 : index
    %c0_1 = arith.constant 0 : index
    %0 = vector.load %arg0[%c0, %c0_0, %c0_1] : memref<64x2x16xbf16, #tpu.memory_space<vmem>>, vector<64x2x16xbf16>
    %1 = arith.extf %0 : vector<64x2x16xbf16> to vector<64x2x16xf32>
    %cst = arith.constant dense<0.000000e+00> : vector<64x2xf32>
    %2 = vector.multi_reduction <add>, %1, %cst [2] : vector<64x2x16xf32> to vector<64x2xf32>
    %cst_2 = arith.constant 1.600000e+01 : f32
    %3 = vector.broadcast %cst_2 : f32 to vector<64x2xf32>
    %4 = arith.divf %2, %3 : vector<64x2xf32>
    %c0_3 = arith.constant 0 : index
    %c0_4 = arith.constant 0 : index
    %5 = vector.load %arg1[%c0_3, %c0_4] : memref<10x64xf32, #tpu.memory_space<vmem>>, vector<10x64xf32>
    %cst_5 = arith.constant dense<0.000000e+00> : vector<10x2xf32>
    %6 = tpu.matmul %5, %4, %cst_5 {dimension_numbers = #tpu.dot_dimension_numbers<[1], [0], [0], [1], [0, 0, 1, 1], [], []>} : vector<10x64xf32>, vector<64x2xf32>, vector<10x2xf32> -> vector<10x2xf32>
    %c0_6 = arith.constant 0 : index
    %c0_7 = arith.constant 0 : index
    %7 = vector.load %arg2[%c0_6, %c0_7] : memref<10x2xf32, #tpu.memory_space<vmem>>, vector<10x2xf32>
    tpu.vector_store %arg2[%c0_6, %c0_7], %6 {strides = array<i32>} : memref<10x2xf32, #tpu.memory_space<vmem>>, vector<10x2xf32>,
    return
  }
}

</mosaic_0001>

<bundles_post_ra>
// kernel: forward.20
= control target key start
LH: loop header
LB: loop body
LE: loop exit
PB: predicated region body
PF: predicated region fallthrough
CT: control target
= control target key end

     0   :  { %s594_s12 = smov 0   ;;  %s596_s13 = smov 0   ;;  %s662_s0 = inlined_call_operand.vmem [shape: bf16[27,512], index: 0, kind: input, shape index: {}]   ;;  %s663_s1 = inlined_call_operand.vmem [shape: bf16[16,27], index: 1, kind: input, shape index: {}]   ;;  %s664_s2 = inlined_call_operand.vmem [shape: bf16[16,512], index: 2, kind: output, shape index: {0}]   ;;  %s665_s3 = inlined_call_operand.vmem [shape: f32[2,16,2], index: 3, kind: output, shape index: {1}]  }
   0x1   :  { %s598_s14 = smov 0  }
   0x2 LB: > { %s610_s15 = sadd.s32 4294967295, %s570_s14   ;;  %s613_s16 = sadd.s32 1, %s570_s14   ;;  %s570_s14 = sphi %s598_s14, %s669_s14   ;;  %s566_s13 = sphi %s596_s13, %s668_s13   ;;  %s562_s12 = sphi %s594_s12, %s667_s12  }
   0x3   : > { %s18_s17 = ssub.s32 %s570_s14, %s613_s16  ;;  %s21_s18 = sadd.s32 1, %s566_s13 }
   0x4   : > { %p19_p0 = scmp.eq.s32.totalorder %s18_s17, 0  ;;  %p28_p1 = scmp.ne.s32.totalorder %s566_s13, %s562_s12 }
   0x5   : > { %p29_p2 = scmp.eq.s32.totalorder %s570_s14, 0  ;;  %p79_p3 = scmp.eq.s32.totalorder %s610_s15, 1 }
   0x6   : > { %s623_s19 = scalar_select %p19_p0, %s566_s13, %s21_s18  }
   0x7   : > { %p30_p4 = por %p29_p2, %p28_p1  ;;  %p625_p5 = por %p79_p3, %p28_p1 }
   0x8   : > { %p488_p6 = scmp.ge.s32.totalorder %s570_s14, 2 }
   0xa   : > { %130 = sbr.rel (%p488_p6) target bundleno = 24 (0x18), region = 20 }
  0x11   : > { %133 = sbr.rel (!%p30_p4) target bundleno = 24 (0x18), region = 24  ;;  %s135_s21 = sand.u32 (%p30_p4), 1, %s566_s13  }
  0x12   : > { %s510_s22 = sshll.u32 (%p30_p4), %s570_s14, 3  ;;  %s489_s23 = sshll.u32 (%p30_p4), %s135_s21, 5 }
  0x13   : > { %s140_s26 = scalar_lea.vmem (%p30_p4), %s662_s0, %s510_s22  ;;  %s137_s27 = scalar_lea.vmem (%p30_p4), [#allocation2], %s489_s23 }
  0x14   : > { %v174_v0 = vld [vmem:[%s140_s26] sm:$0xff] (%p30_p4)  ;;  %v176_v1 = vld [vmem:[%s140_s26 + $0x10] sm:$0xff] (%p30_p4) }
  0x15   : > { %v178_v2 = vld [vmem:[%s140_s26 + $0x20] sm:$0xff] (%p30_p4)  ;;  %175 = vst [vmem:[%s137_s27] sm:$0xff] (%p30_p4), %v174_v0  ;;  %177 = vst [vmem:[%s137_s27 + $0x8] sm:$0xff] (%p30_p4), %v176_v1  ;;  %v180_v3 = vld [vmem:[%s140_s26 + $0x30] sm:$0xff] (%p30_p4) }
  0x16   : > { %179 = vst [vmem:[%s137_s27 + $0x10] sm:$0xff] (%p30_p4), %v178_v2  ;;  %181 = vst [vmem:[%s137_s27 + $0x18] sm:$0xff] (%p30_p4), %v180_v3 }
  0x18 PF: > { %p492_p7 = scmp.ge.s32.totalorder %s570_s14, 1  ;;  %p186_p8 = scmp.lt.s32.totalorder %s570_s14, 3 }
  0x1a   : > { %p187_p9 = pnand %p492_p7, %p186_p8 }
  0x1b   : > { %s193_s28 = sand.u32 (!%p187_p9), 1, %s562_s12   ;;  %vm261_vm0 = vcmask (!%p187_p9), 1044480   ;;  %vm262_vm1 = vcmask (!%p187_p9), 1045504   ;;  %v572_v4 = vmov (!%p187_p9), 65535   ;;  %v573_v6 = vmov (!%p187_p9), 0   ;;  %v547_v14 = vld [vmem:[%s663_s1] sm:$0xff] (!%p187_p9)  }
  0x1c   : > { %190 = sbr.rel (%p187_p9) target bundleno = 403 (0x193), region = 62  ;;  %s493_s29 = sshll.u32 (!%p187_p9), %s193_s28, 5  ;;  %v263_v5 = vsel (!%p187_p9), %vm261_vm0, 4294967295, %v572_v4  ;;  %303 = vmatprep.mubr.bf16.mxu0 (!%p187_p9), %v573_v6  ;;  %vm257_vm2 = vcmask (!%p187_p9), 220160   ;;  %vm334_vm3 = vcmask (!%p187_p9), 7168   ;;  %vm347_vm4 = vcmask (!%p187_p9), 15368  }
  0x1d   : > { %s195_s30 = scalar_lea.vmem (!%p187_p9), [#allocation2], %s493_s29  ;;  %v264_v9 = vsel (!%p187_p9), %vm262_vm1, %v263_v5, 0  ;;  %s494_s6 = sshll.u32 (!%p187_p9), %s193_s28, 4 }
  0x1e   : > { %v541_v7 = vld [vmem:[%s195_s30 + $0x4] ss:$8 sps:$4 sm:$0xff] (!%p187_p9)   ;;  %v543_v8 = vld [vmem:[%s195_s30] ss:$8 sps:$4 sm:$0xff] (!%p187_p9)   ;;  %s212_s7 = scalar_lea.vmem (!%p187_p9), [#allocation3], %s494_s6  ;;  %p222_p10 = scmp.lt.s32.totalorder (!%p187_p9), %s610_s15, 1 }
  0x1f   : > { %271 = vmatprep.subr.bf16.mxu0 (!%p187_p9), %v541_v7  ;;  %v544_v10 = vld [vmem:[%s195_s30 + $0x14] ss:$8 sps:$4 sm:$0x3f] (!%p187_p9)   ;;  %v546_v11 = vld [vmem:[%s195_s30 + $0x10] ss:$8 sps:$4 sm:$0x3f] (!%p187_p9)  }
  0x20   : > { %272 = vmatpush1.bf16.msra.mxu0 (!%p187_p9), %v543_v8  ;;  %v269_v12 = vand.u32 (!%p187_p9), %v544_v10, %v264_v9  ;;  %v266_v13 = vand.u32 (!%p187_p9), %v546_v11, %v264_v9 }
  0x22   : > { %273 = vmatprep.subr.bf16.mxu0 (!%p187_p9), %v269_v12 }
  0x23   : > { %s223_s8 = scalar_select %p222_p10, %s610_s15, 1 }
  0x24   : > { %274 = vmatpush1.bf16.msra.mxu0 %v266_v13  ;;  %s514_s14 = sshll.u32 (%p625_p5), %s610_s15, 3 }
  0x25   : > { %s511_s9 = sshll.u32 %s223_s8, 4  ;;  %s364_s21 = scalar_lea.vmem (%p625_p5), %s664_s2, %s514_s14 }
  0x26   : > { %s226_s12 = scalar_lea.vmem %s665_s3, %s511_s9 }
  0x27   : > { %502 = vmatmul.mubr.msk.bf16.vlgmr.msra.gmra.mrb[0].mxu0 %vm257_vm2, %v547_v14 }
  0xfa   : > { %v305_v15 = vpop.f32.mrb[0].mxu0 }
  0xfb   : > { %v307_v16 = vpop.f32.mrb[1].mxu0  ;;  %v337_v17 = vmul.f32 %v305_v15, %v305_v15 }
  0xfc   : > { %v512_v18 = vpack.c.bf16 %v307_v16, %v305_v15  ;;  %v309_v19 = vpop.f32.mrb[2].mxu0  ;;  %v328_v20 = vadd.f32 %v307_v16, %v305_v15  ;;  %v338_v21 = vmul.f32 %v307_v16, %v307_v16 }
  0xfd   : > { %v311_v22 = vpop.f32.mrb[3].mxu0  ;;  %v339_v23 = vmul.f32 %v309_v19, %v309_v19 }
  0xfe   : > { %v513_v24 = vpack.c.bf16 %v311_v22, %v309_v19  ;;  %326 = vst [vmem:[%s212_s7] sm:$0xff] %v512_v18  ;;  %v340_v25 = vmul.f32 %v311_v22, %v311_v22  ;;  %329 = vadd.xlane.f32.xlu0 %v328_v20  ;;  %v341_v26 = vadd.f32 %v338_v21, %v337_v17 }
  0xff   : > { %v331_v27 = vadd.f32 %v311_v22, %v309_v19 }
 0x100   : > { %327 = vst [vmem:[%s212_s7 + $0x8] sm:$0xff] %v513_v24  ;;  %342 = vadd.xlane.f32.xlu1 %v341_v26  ;;  %v344_v28 = vadd.f32 %v340_v25, %v339_v23 }
 0x102   : > { %332 = vadd.xlane.f32.xlu0 %v331_v27 }
 0x104   : > { %345 = vadd.xlane.f32.xlu1 %v344_v28 }
 0x105   : > { %v394_v33 = vld [vmem:[%s212_s7] sm:$0xff] (%p625_p5) }
 0x106   : > { %395 = vst [vmem:[%s364_s21] sm:$0xff] (%p625_p5), %v394_v33 }
 0x107   : > { %v396_v34 = vld [vmem:[%s212_s7 + $0x8] sm:$0xff] (%p625_p5) }
 0x108   : > { %397 = vst [vmem:[%s364_s21 + $0x10] sm:$0xff] (%p625_p5), %v396_v34 }
 0x18b   : > { %v330_v29 = vpop.xlane.xlu0 %329 }
 0x18c   : > { %335 = vst.msk [vmem:[%s226_s12] sm:$0xff] %vm334_vm3, %v330_v29  ;;  %361 = sbr.rel (!%p625_p5) target bundleno = 403 (0x193), region = 70 }
 0x18d   : > { %v343_v30 = vpop.xlane.xlu1 %342 }
 0x18e   : > { %348 = vst.msk [vmem:[%s226_s12] sm:$0xff] %vm347_vm4, %v343_v30 }
 0x18f   : > { %v333_v31 = vpop.xlane.xlu0 %332 }
 0x190   : > { %336 = vst.msk [vmem:[%s226_s12 + $0x8] sm:$0xff] %vm334_vm3, %v333_v31 }
 0x191   : > { %v346_v32 = vpop.xlane.xlu1 %345 }
 0x192   : > { %349 = vst.msk [vmem:[%s226_s12 + $0x8] sm:$0xff] %vm347_vm4, %v346_v32 }
 0x193 PF: > { %p11_p11 = scmp.ge.s32.totalorder %s613_s16, 4   ;;  %s667_s12 = smov %s566_s13 }
 0x194   : > { %s668_s13 = smov %s623_s19  ;;  %s669_s14 = smov %s613_s16 }
 0x195   :  { %13 = sbr.rel (!%p11_p11) target bundleno = 2 (0x2), region = 151 }

// kernel: forward.21
= control target key start
LH: loop header
LB: loop body
LE: loop exit
PB: predicated region body
PF: predicated region fallthrough
CT: control target
= control target key end

     0   :  { %s764_s12 = smov 0   ;;  %s766_s13 = smov 0   ;;  %s879_s0 = inlined_call_operand.vmem [shape: bf16[144,512], index: 0, kind: input, shape index: {}]   ;;  %s880_s1 = inlined_call_operand.vmem [shape: bf16[16,144], index: 1, kind: input, shape index: {}]   ;;  %s881_s2 = inlined_call_operand.vmem [shape: bf16[16,512], index: 2, kind: output, shape index: {0}]   ;;  %s882_s3 = inlined_call_operand.vmem [shape: f32[2,16,2], index: 3, kind: output, shape index: {1}]  }
   0x1   :  { %s768_s14 = smov 0  }
   0x2 LB: > { %s780_s15 = sadd.s32 4294967295, %s742_s14   ;;  %s783_s16 = sadd.s32 1, %s742_s14   ;;  %s742_s14 = sphi %s768_s14, %s886_s14   ;;  %s738_s13 = sphi %s766_s13, %s885_s13   ;;  %s734_s12 = sphi %s764_s12, %s884_s12  }
   0x3   : > { %s18_s17 = ssub.s32 %s742_s14, %s783_s16  ;;  %s21_s18 = sadd.s32 1, %s738_s13 }
   0x4   : > { %p19_p0 = scmp.eq.s32.totalorder %s18_s17, 0  ;;  %p28_p1 = scmp.ne.s32.totalorder %s738_s13, %s734_s12 }
   0x5   : > { %p29_p2 = scmp.eq.s32.totalorder %s742_s14, 0  ;;  %p79_p3 = scmp.eq.s32.totalorder %s780_s15, 1 }
   0x6   : > { %s793_s19 = scalar_select %p19_p0, %s738_s13, %s21_s18  }
   0x7   : > { %p30_p4 = por %p29_p2, %p28_p1  ;;  %p795_p5 = por %p79_p3, %p28_p1 }
   0x8   : > { %p624_p6 = scmp.ge.s32.totalorder %s742_s14, 2 }
   0xa   : > { %130 = sbr.rel (%p624_p6) target bundleno = 30 (0x1e), region = 20 }
  0x11   : > { %133 = sbr.rel (!%p30_p4) target bundleno = 30 (0x1e), region = 24  ;;  %s135_s21 = sand.u32 (%p30_p4), 1, %s738_s13  }
  0x12   : > { %s659_s22 = sshll.u32 (%p30_p4), %s742_s14, 3  ;;  %s664_s23 = smul.u32 (%p30_p4), 144, %s135_s21 }
  0x13   : > { %s805_s26 = scalar_lea.vmem (%p30_p4), %s879_s0, %s659_s22 }
  0x14   : > { %v202_v0 = vld [vmem:[%s805_s26] sm:$0xff] (%p30_p4)  ;;  %v204_v1 = vld [vmem:[%s805_s26 + $0x10] sm:$0xff] (%p30_p4)  ;;  %s137_s27 = scalar_lea.vmem (%p30_p4), [#allocation2], %s664_s23 }
  0x15   : > { %v206_v2 = vld [vmem:[%s805_s26 + $0x20] sm:$0xff] (%p30_p4)  ;;  %v208_v3 = vld [vmem:[%s805_s26 + $0x30] sm:$0xff] (%p30_p4)  ;;  %203 = vst [vmem:[%s137_s27] sm:$0xff] (%p30_p4), %v202_v0  ;;  %205 = vst [vmem:[%s137_s27 + $0x8] sm:$0xff] (%p30_p4), %v204_v1 }
  0x16   : > { %v210_v4 = vld [vmem:[%s805_s26 + $0x40] sm:$0xff] (%p30_p4)  ;;  %v212_v5 = vld [vmem:[%s805_s26 + $0x50] sm:$0xff] (%p30_p4)  ;;  %207 = vst [vmem:[%s137_s27 + $0x10] sm:$0xff] (%p30_p4), %v206_v2  ;;  %209 = vst [vmem:[%s137_s27 + $0x18] sm:$0xff] (%p30_p4), %v208_v3 }
  0x17   : > { %211 = vst [vmem:[%s137_s27 + $0x20] sm:$0xff] (%p30_p4), %v210_v4  ;;  %213 = vst [vmem:[%s137_s27 + $0x28] sm:$0xff] (%p30_p4), %v212_v5  ;;  %v214_v6 = vld [vmem:[%s805_s26 + $0x60] sm:$0xff] (%p30_p4)  ;;  %v216_v7 = vld [vmem:[%s805_s26 + $0x70] sm:$0xff] (%p30_p4) }
  0x18   : > { %v218_v8 = vld [vmem:[%s805_s26 + $0x80] sm:$0xff]  ;;  %215 = vst [vmem:[%s137_s27 + $0x30] sm:$0xff] %v214_v6  ;;  %217 = vst [vmem:[%s137_s27 + $0x38] sm:$0xff] %v216_v7  ;;  %v220_v9 = vld [vmem:[%s805_s26 + $0x90] sm:$0xff] }
  0x19   : > { %219 = vst [vmem:[%s137_s27 + $0x40] sm:$0xff] %v218_v8  ;;  %v222_v10 = vld [vmem:[%s805_s26 + $0xa0] sm:$0xff]  ;;  %v224_v11 = vld [vmem:[%s805_s26 + $0xb0] sm:$0xff]  ;;  %221 = vst [vmem:[%s137_s27 + $0x48] sm:$0xff] %v220_v9 }
  0x1a   : > { %223 = vst [vmem:[%s137_s27 + $0x50] sm:$0xff] %v222_v10  ;;  %225 = vst [vmem:[%s137_s27 + $0x58] sm:$0xff] %v224_v11  ;;  %v226_v12 = vld [vmem:[%s805_s26 + $0xc0] sm:$0xff]  ;;  %v228_v13 = vld [vmem:[%s805_s26 + $0xd0] sm:$0xff] }
  0x1b   : > { %v230_v14 = vld [vmem:[%s805_s26 + $0xe0] sm:$0xff]  ;;  %227 = vst [vmem:[%s137_s27 + $0x60] sm:$0xff] %v226_v12  ;;  %229 = vst [vmem:[%s137_s27 + $0x68] sm:$0xff] %v228_v13  ;;  %v232_v15 = vld [vmem:[%s805_s26 + $0xf0] sm:$0xff] }
  0x1c   : > { %231 = vst [vmem:[%s137_s27 + $0x70] sm:$0xff] %v230_v14  ;;  %v234_v16 = vld [vmem:[%s805_s26 + $0x100] sm:$0xff]  ;;  %v236_v17 = vld [vmem:[%s805_s26 + $0x110] sm:$0xff]  ;;  %233 = vst [vmem:[%s137_s27 + $0x78] sm:$0xff] %v232_v15 }
  0x1d   : > { %235 = vst [vmem:[%s137_s27 + $0x80] sm:$0xff] %v234_v16  ;;  %237 = vst [vmem:[%s137_s27 + $0x88] sm:$0xff] %v236_v17 }
  0x1e PF: > { %p627_p7 = scmp.ge.s32.totalorder %s742_s14, 1  ;;  %p242_p8 = scmp.lt.s32.totalorder %s742_s14, 3 }
  0x20   : > { %p243_p9 = pnand %p627_p7, %p242_p8 }
  0x21   : > { %s249_s28 = sand.u32 (!%p243_p9), 1, %s734_s12   ;;  %vm403_vm0 = vcmask (!%p243_p9), 130048   ;;  %v719_v18 = vld [vmem:[%s880_s1 + $0x4] ss:$8 sps:$4 sm:$0xff] (!%p243_p9)   ;;  %v717_v37 = vld [vmem:[%s880_s1] ss:$8 sps:$4 sm:$0xff] (!%p243_p9)  }
  0x22   : > { %246 = sbr.rel (%p243_p9) target bundleno = 439 (0x1b7), region = 62  ;;  %651 = vmatprep.mubr.msk.bf16.mxu0 (!%p243_p9), %vm403_vm0, %v719_v18  ;;  %s628_s8 = sshll.u32 (!%p243_p9), %s249_s28, 4  ;;  %vm470_vm1 = vcmask (!%p243_p9), 7168   ;;  %vm483_vm2 = vcmask (!%p243_p9), 15368  }
  0x23   : > { %s665_s29 = smul.u32 (!%p243_p9), 144, %s249_s28  ;;  %s268_s9 = scalar_lea.vmem (!%p243_p9), [#allocation3], %s628_s8 }
  0x24   : > { %p278_p10 = scmp.lt.s32.totalorder (!%p243_p9), %s780_s15, 1 }
  0x25   : > { %s833_s5 = scalar_lea.vmem (!%p243_p9), [#allocation2], %s665_s29 }
  0x26   : > { %v690_v19 = vld [vmem:[%s833_s5 + $0x4] ss:$8 sps:$4 sm:$0xff] (!%p243_p9)   ;;  %v692_v20 = vld [vmem:[%s833_s5] ss:$8 sps:$4 sm:$0xff] (!%p243_p9)   ;;  %v693_v21 = vld [vmem:[%s833_s5 + $0x14] ss:$8 sps:$4 sm:$0xff] (!%p243_p9)  }
  0x27   : > { %407 = vmatprep.subr.bf16.mxu0 (!%p243_p9), %v690_v19  ;;  %v695_v22 = vld [vmem:[%s833_s5 + $0x10] ss:$8 sps:$4 sm:$0xff] (!%p243_p9)   ;;  %v696_v23 = vld [vmem:[%s833_s5 + $0x24] ss:$8 sps:$4 sm:$0xff] (!%p243_p9)   ;;  %v698_v24 = vld [vmem:[%s833_s5 + $0x20] ss:$8 sps:$4 sm:$0xff] (!%p243_p9)  }
  0x28   : > { %408 = vmatpush1.bf16.msra.mxu0 (!%p243_p9), %v692_v20  ;;  %v699_v25 = vld [vmem:[%s833_s5 + $0x34] ss:$8 sps:$4 sm:$0xff] (!%p243_p9)   ;;  %v701_v26 = vld [vmem:[%s833_s5 + $0x30] ss:$8 sps:$4 sm:$0xff] (!%p243_p9)   ;;  %v702_v27 = vld [vmem:[%s833_s5 + $0x44] ss:$8 sps:$4 sm:$0xff] (!%p243_p9)  }
  0x29   : > { %409 = vmatprep.subr.bf16.mxu0 %v693_v21  ;;  %v704_v28 = vld [vmem:[%s833_s5 + $0x40] ss:$8 sps:$4 sm:$0xff]   ;;  %v705_v29 = vld [vmem:[%s833_s5 + $0x54] ss:$8 sps:$4 sm:$0xff]   ;;  %v707_v30 = vld [vmem:[%s833_s5 + $0x50] ss:$8 sps:$4 sm:$0xff]  }
  0x2a   : > { %v708_v31 = vld [vmem:[%s833_s5 + $0x64] ss:$8 sps:$4 sm:$0xff]   ;;  %v710_v32 = vld [vmem:[%s833_s5 + $0x60] ss:$8 sps:$4 sm:$0xff]   ;;  %v711_v33 = vld [vmem:[%s833_s5 + $0x74] ss:$8 sps:$4 sm:$0xff]  }
  0x2b   : > { %v713_v34 = vld [vmem:[%s833_s5 + $0x70] ss:$8 sps:$4 sm:$0xff]   ;;  %v714_v35 = vld [vmem:[%s833_s5 + $0x84] ss:$8 sps:$4 sm:$0xff]   ;;  %v716_v36 = vld [vmem:[%s833_s5 + $0x80] ss:$8 sps:$4 sm:$0xff]  }
  0x2c   : > { %410 = vmatpush1.bf16.msra.mxu0 %v695_v22  ;;  %s279_s10 = scalar_select %p278_p10, %s780_s15, 1 }
  0x2d   : > { %411 = vmatprep.subr.bf16.mxu0 %v696_v23  ;;  %s663_s18 = sshll.u32 (%p795_p5), %s780_s15, 3 }
  0x2e   : > { %s660_s11 = sshll.u32 %s279_s10, 4  ;;  %s500_s23 = scalar_lea.vmem (%p795_p5), %s881_s2, %s663_s18 }
  0x2f   : > { %s282_s17 = scalar_lea.vmem %s882_s3, %s660_s11 }
  0x30   : > { %412 = vmatpush1.bf16.msra.mxu0 %v698_v24 }
  0x31   : > { %413 = vmatprep.subr.bf16.mxu0 %v699_v25 }
  0x34   : > { %414 = vmatpush1.bf16.msra.mxu0 %v701_v26 }
  0x35   : > { %415 = vmatprep.subr.bf16.mxu0 %v702_v27 }
  0x38   : > { %416 = vmatpush1.bf16.msra.mxu0 %v704_v28 }
  0x39   : > { %417 = vmatprep.subr.bf16.mxu0 %v705_v29 }
  0x3c   : > { %418 = vmatpush1.bf16.msra.mxu0 %v707_v30 }
  0x3d   : > { %419 = vmatprep.subr.bf16.mxu0 %v708_v31 }
  0x40   : > { %420 = vmatpush1.bf16.msra.mxu0 %v710_v32 }
  0x41   : > { %421 = vmatprep.subr.bf16.mxu0 %v711_v33 }
  0x44   : > { %422 = vmatpush1.bf16.msra.mxu0 %v713_v34 }
  0x45   : > { %423 = vmatprep.subr.bf16.mxu0 %v714_v35 }
  0x48   : > { %424 = vmatpush1.bf16.msra.mxu0 %v716_v36 }
  0x4b   : > { %440 = vmatmul.mubr.bf16.vlgmr.msra.gmra.mrb[0].mxu0 %v717_v37 }
 0x11e   : > { %v441_v38 = vpop.f32.mrb[0].mxu0 }
 0x11f   : > { %v443_v39 = vpop.f32.mrb[1].mxu0  ;;  %v473_v40 = vmul.f32 %v441_v38, %v441_v38 }
 0x120   : > { %v661_v41 = vpack.c.bf16 %v443_v39, %v441_v38  ;;  %v445_v42 = vpop.f32.mrb[2].mxu0  ;;  %v464_v43 = vadd.f32 %v443_v39, %v441_v38  ;;  %v474_v44 = vmul.f32 %v443_v39, %v443_v39 }
 0x121   : > { %v447_v45 = vpop.f32.mrb[3].mxu0  ;;  %v475_v46 = vmul.f32 %v445_v42, %v445_v42 }
 0x122   : > { %v662_v47 = vpack.c.bf16 %v447_v45, %v445_v42  ;;  %462 = vst [vmem:[%s268_s9] sm:$0xff] %v661_v41  ;;  %v476_v48 = vmul.f32 %v447_v45, %v447_v45  ;;  %465 = vadd.xlane.f32.xlu0 %v464_v43  ;;  %v477_v49 = vadd.f32 %v474_v44, %v473_v40 }
 0x123   : > { %v467_v50 = vadd.f32 %v447_v45, %v445_v42 }
 0x124   : > { %463 = vst [vmem:[%s268_s9 + $0x8] sm:$0xff] %v662_v47  ;;  %478 = vadd.xlane.f32.xlu1 %v477_v49  ;;  %v480_v51 = vadd.f32 %v476_v48, %v475_v46 }
 0x126   : > { %468 = vadd.xlane.f32.xlu0 %v467_v50 }
 0x128   : > { %481 = vadd.xlane.f32.xlu1 %v480_v51 }
 0x129   : > { %v530_v56 = vld [vmem:[%s268_s9] sm:$0xff] (%p795_p5) }
 0x12a   : > { %531 = vst [vmem:[%s500_s23] sm:$0xff] (%p795_p5), %v530_v56 }
 0x12b   : > { %v532_v57 = vld [vmem:[%s268_s9 + $0x8] sm:$0xff] (%p795_p5) }
 0x12c   : > { %533 = vst [vmem:[%s500_s23 + $0x10] sm:$0xff] (%p795_p5), %v532_v57 }
 0x1af   : > { %v466_v52 = vpop.xlane.xlu0 %465 }
 0x1b0   : > { %471 = vst.msk [vmem:[%s282_s17] sm:$0xff] %vm470_vm1, %v466_v52  ;;  %497 = sbr.rel (!%p795_p5) target bundleno = 439 (0x1b7), region = 70 }
 0x1b1   : > { %v479_v53 = vpop.xlane.xlu1 %478 }
 0x1b2   : > { %484 = vst.msk [vmem:[%s282_s17] sm:$0xff] %vm483_vm2, %v479_v53 }
 0x1b3   : > { %v469_v54 = vpop.xlane.xlu0 %468 }
 0x1b4   : > { %472 = vst.msk [vmem:[%s282_s17 + $0x8] sm:$0xff] %vm470_vm1, %v469_v54 }
 0x1b5   : > { %v482_v55 = vpop.xlane.xlu1 %481 }
 0x1b6   : > { %485 = vst.msk [vmem:[%s282_s17 + $0x8] sm:$0xff] %vm483_vm2, %v482_v55 }
 0x1b7 PF: > { %p11_p11 = scmp.ge.s32.totalorder %s783_s16, 4   ;;  %s884_s12 = smov %s738_s13 }
 0x1b8   : > { %s885_s13 = smov %s793_s19  ;;  %s886_s14 = smov %s783_s16 }
 0x1b9   :  { %13 = sbr.rel (!%p11_p11) target bundleno = 2 (0x2), region = 151 }

// kernel: forward.27
= control target key start
LH: loop header
LB: loop body
LE: loop exit
PB: predicated region body
PF: predicated region fallthrough
CT: control target
= control target key end

     0   :  { %v290_v0 = vmov 0   ;;  %vm108_vm0 = vcmask 130048   ;;  %vm192_vm1 = vcmask 7168   ;;  %vm209_vm2 = vcmask 15368   ;;  %s380_s0 = inlined_call_operand.vmem [shape: bf16[144,128], index: 0, kind: input, shape index: {}]   ;;  %s381_s1 = inlined_call_operand.vmem [shape: bf16[32,144], index: 1, kind: input, shape index: {}]   ;;  %s382_s2 = inlined_call_operand.vmem [shape: bf16[32,128], index: 2, kind: output, shape index: {0}]   ;;  %s383_s3 = inlined_call_operand.vmem [shape: f32[1,32,2], index: 3, kind: output, shape index: {1}]  }
   0x1   :  { %115 = vmatprep.subr.bf16.mxu0 %v290_v0  ;;  %256 = vmatprep.subr.bf16.mxu1 %v290_v0  ;;  %v275_v1 = vld [vmem:[%s380_s0] sm:$0xff]   ;;  %v276_v2 = vld [vmem:[%s380_s0 + $0x8] sm:$0xff]   ;;  %v277_v3 = vld [vmem:[%s380_s0 + $0x10] sm:$0xff]  }
   0x2   :  { %116 = vmatpush1.bf16.msra.mxu0 %v275_v1  ;;  %265 = vmatpush1.bf16.msra.mxu1 %v275_v1  ;;  %v278_v4 = vld [vmem:[%s380_s0 + $0x18] sm:$0xff]   ;;  %v286_v5 = vld [vmem:[%s381_s1 + $0x4] ss:$8 sps:$4 sm:$0xff]   ;;  %v281_v9 = vld [vmem:[%s380_s0 + $0x30] sm:$0xff]  }
   0x3   :  { %117 = vmatprep.subr.bf16.mxu0 %v290_v0  ;;  %257 = vmatprep.subr.bf16.mxu1 %v290_v0  ;;  %v289_v6 = vld [vmem:[%s381_s1 + $0x14] ss:$8 sps:$4 sm:$0xff]   ;;  %v279_v7 = vld [vmem:[%s380_s0 + $0x20] sm:$0xff]   ;;  %v280_v8 = vld [vmem:[%s380_s0 + $0x28] sm:$0xff]  }
   0x4   :  { %235 = vmatprep.mubr.msk.bf16.mxu0 %vm108_vm0, %v286_v5  ;;  %236 = vmatprep.mubr.msk.bf16.mxu1 %vm108_vm0, %v289_v6  ;;  %v282_v10 = vld [vmem:[%s380_s0 + $0x38] sm:$0xff]   ;;  %v283_v11 = vld [vmem:[%s380_s0 + $0x40] sm:$0xff]  }
   0x5   :  { %v284_v12 = vld [vmem:[%s381_s1] ss:$8 sps:$4 sm:$0xff]   ;;  %v287_v13 = vld [vmem:[%s381_s1 + $0x10] ss:$8 sps:$4 sm:$0xff]  }
   0x6   :  { %118 = vmatpush1.bf16.msra.mxu0 %v276_v2  ;;  %266 = vmatpush1.bf16.msra.mxu1 %v276_v2 }
   0x7   :  { %119 = vmatprep.subr.bf16.mxu0 %v290_v0  ;;  %258 = vmatprep.subr.bf16.mxu1 %v290_v0 }
   0xa   :  { %120 = vmatpush1.bf16.msra.mxu0 %v277_v3  ;;  %267 = vmatpush1.bf16.msra.mxu1 %v277_v3 }
   0xb   :  { %121 = vmatprep.subr.bf16.mxu0 %v290_v0  ;;  %259 = vmatprep.subr.bf16.mxu1 %v290_v0 }
   0xe   :  { %122 = vmatpush1.bf16.msra.mxu0 %v278_v4  ;;  %268 = vmatpush1.bf16.msra.mxu1 %v278_v4 }
   0xf   :  { %123 = vmatprep.subr.bf16.mxu0 %v290_v0  ;;  %260 = vmatprep.subr.bf16.mxu1 %v290_v0 }
  0x12   :  { %124 = vmatpush1.bf16.msra.mxu0 %v279_v7  ;;  %269 = vmatpush1.bf16.msra.mxu1 %v279_v7 }
  0x13   :  { %125 = vmatprep.subr.bf16.mxu0 %v290_v0  ;;  %261 = vmatprep.subr.bf16.mxu1 %v290_v0 }
  0x16   :  { %126 = vmatpush1.bf16.msra.mxu0 %v280_v8  ;;  %270 = vmatpush1.bf16.msra.mxu1 %v280_v8 }
  0x17   :  { %127 = vmatprep.subr.bf16.mxu0 %v290_v0  ;;  %262 = vmatprep.subr.bf16.mxu1 %v290_v0 }
  0x1a   :  { %128 = vmatpush1.bf16.msra.mxu0 %v281_v9  ;;  %271 = vmatpush1.bf16.msra.mxu1 %v281_v9 }
  0x1b   :  { %129 = vmatprep.subr.bf16.mxu0 %v290_v0  ;;  %263 = vmatprep.subr.bf16.mxu1 %v290_v0 }
  0x1e   :  { %130 = vmatpush1.bf16.msra.mxu0 %v282_v10  ;;  %272 = vmatpush1.bf16.msra.mxu1 %v282_v10 }
  0x1f   :  { %131 = vmatprep.subr.bf16.mxu0 %v290_v0  ;;  %264 = vmatprep.subr.bf16.mxu1 %v290_v0 }
  0x22   :  { %132 = vmatpush1.bf16.msra.mxu0 %v283_v11  ;;  %273 = vmatpush1.bf16.msra.mxu1 %v283_v11 }
  0x25   :  { %148 = vmatmul.mubr.bf16.vlgmr.msra.gmra.mrb[0].mxu0 %v284_v12  ;;  %156 = vmatmul.mubr.bf16.vlgmr.msra.gmra.mrb[0].mxu1 %v287_v13 }
  0xf8   :  { %v149_v14 = vpop.f32.mrb[0].mxu0  ;;  %v157_v15 = vpop.f32.mrb[0].mxu1 }
  0xf9   :  { %188 = vadd.xlane.f32.xlu1 %v157_v15  ;;  %v159_v16 = vpop.f32.mrb[1].mxu1  ;;  %184 = vadd.xlane.f32.xlu0 %v149_v14  ;;  %v151_v17 = vpop.f32.mrb[1].mxu0  ;;  %v197_v24 = vmul.f32 %v149_v14, %v149_v14  ;;  %v199_v26 = vmul.f32 %v157_v15, %v157_v15 }
  0xfa   :  { %v152_v18 = vpop.f32.mrb[2].mxu0  ;;  %v160_v19 = vpop.f32.mrb[2].mxu1 }
  0xfb   :  { %v248_v20 = vpack.c.bf16 %v152_v18, %v149_v14  ;;  %v253_v21 = vpack.c.bf16 %v160_v19, %v157_v15  ;;  %v154_v22 = vpop.f32.mrb[3].mxu0  ;;  %v162_v23 = vpop.f32.mrb[3].mxu1  ;;  %v198_v25 = vmul.f32 %v152_v18, %v152_v18  ;;  %v200_v27 = vmul.f32 %v160_v19, %v160_v19 }
  0xfd   :  { %249 = vst [vmem:[%s382_s2] sm:$0xff] %v248_v20   ;;  %255 = vst [vmem:[%s382_s2 + $0x8] sm:$0xff] %v253_v21   ;;  %190 = vadd.xlane.f32.xlu1 %v160_v19  ;;  %186 = vadd.xlane.f32.xlu0 %v152_v18 }
 0x101   :  { %201 = vadd.xlane.f32.xlu0 %v197_v24  ;;  %203 = vadd.xlane.f32.xlu1 %v198_v25 }
 0x105   :  { %205 = vadd.xlane.f32.xlu0 %v199_v26  ;;  %207 = vadd.xlane.f32.xlu1 %v200_v27 }
 0x186   :  { %v189_v28 = vpop.xlane.xlu1 %188  ;;  %v185_v29 = vpop.xlane.xlu0 %184 }
 0x187   :  { %195 = vst.msk [vmem:[%s383_s3 + $0x10] sm:$0xff] %vm192_vm1, %v189_v28  ;;  %193 = vst.msk [vmem:[%s383_s3] sm:$0xff] %vm192_vm1, %v185_v29 }
 0x18a   :  { %v191_v30 = vpop.xlane.xlu1 %190  ;;  %v187_v31 = vpop.xlane.xlu0 %186 }
 0x18b   :  { %196 = vst.msk [vmem:[%s383_s3 + $0x18] sm:$0xff] %vm192_vm1, %v191_v30  ;;  %194 = vst.msk [vmem:[%s383_s3 + $0x8] sm:$0xff] %vm192_vm1, %v187_v31 }
 0x18e   :  { %v202_v32 = vpop.xlane.xlu0 %201  ;;  %v204_v33 = vpop.xlane.xlu1 %203 }
 0x18f   :  { %210 = vst.msk [vmem:[%s383_s3] sm:$0xff] %vm209_vm2, %v202_v32  ;;  %211 = vst.msk [vmem:[%s383_s3 + $0x8] sm:$0xff] %vm209_vm2, %v204_v33 }
 0x192   :  { %v206_v34 = vpop.xlane.xlu0 %205  ;;  %v208_v35 = vpop.xlane.xlu1 %207 }
 0x193   :  { %212 = vst.msk [vmem:[%s383_s3 + $0x10] sm:$0xff] %vm209_vm2, %v206_v34  ;;  %213 = vst.msk [vmem:[%s383_s3 + $0x18] sm:$0xff] %vm209_vm2, %v208_v35 }

// kernel: forward.28
= control target key start
LH: loop header
LB: loop body
LE: loop exit
PB: predicated region body
PF: predicated region fallthrough
CT: control target
= control target key end

     0   :  { %vm196_vm0 = vcmask 261120   ;;  %vm329_vm1 = vcmask 7168   ;;  %vm346_vm2 = vcmask 15368   ;;  %s592_s0 = inlined_call_operand.vmem [shape: bf16[288,128], index: 0, kind: input, shape index: {}]   ;;  %s593_s1 = inlined_call_operand.vmem [shape: bf16[32,288], index: 1, kind: input, shape index: {}]   ;;  %s594_s2 = inlined_call_operand.vmem [shape: bf16[32,128], index: 2, kind: output, shape index: {0}]   ;;  %s595_s3 = inlined_call_operand.vmem [shape: f32[1,32,2], index: 3, kind: output, shape index: {1}]  }
   0x1   :  { %v444_v0 = vld [vmem:[%s592_s0 + $0x40] sm:$0xff]   ;;  %v446_v2 = vld [vmem:[%s592_s0 + $0x48] sm:$0xff]   ;;  %v448_v4 = vld [vmem:[%s592_s0 + $0x50] sm:$0xff]  }
   0x2   :  { %v445_v1 = vld [vmem:[%s592_s0] sm:$0xff]   ;;  %404 = vmatprep.subr.bf16.mxu0 %v444_v0  ;;  %v447_v3 = vld [vmem:[%s592_s0 + $0x8] sm:$0xff]   ;;  %v449_v5 = vld [vmem:[%s592_s0 + $0x10] sm:$0xff]  }
   0x3   :  { %405 = vmatpush3.bf16.msra.mxu0 %v445_v1  ;;  %v450_v6 = vld [vmem:[%s592_s0 + $0x58] sm:$0xff]   ;;  %v452_v8 = vld [vmem:[%s592_s0 + $0x60] sm:$0xff]   ;;  %v459_v11 = vld [vmem:[%s592_s0 + $0x88] sm:$0xff]  }
   0x4   :  { %406 = vmatprep.subr.bf16.mxu0 %v446_v2  ;;  %v451_v7 = vld [vmem:[%s592_s0 + $0x18] sm:$0xff]   ;;  %v456_v9 = vld [vmem:[%s592_s0 + $0x80] sm:$0xff]   ;;  %v454_v12 = vld [vmem:[%s592_s0 + $0x68] sm:$0xff]  }
   0x5   :  { %v453_v10 = vld [vmem:[%s592_s0 + $0x20] sm:$0xff]   ;;  %436 = vmatprep.subr.bf16.mxu1 %v456_v9  ;;  %v455_v13 = vld [vmem:[%s592_s0 + $0x28] sm:$0xff]   ;;  %v457_v15 = vld [vmem:[%s592_s0 + $0x70] sm:$0xff]  }
   0x6   :  { %437 = vmatpush3.bf16.msra.mxu1 %v456_v9  ;;  %v462_v14 = vld [vmem:[%s593_s1 + $0x8] ss:$12 sps:$4 sm:$0xff]   ;;  %v465_v16 = vld [vmem:[%s593_s1 + $0x4] ss:$12 sps:$4 sm:$0xff]   ;;  %v466_v17 = vld [vmem:[%s593_s1 + $0x20] ss:$12 sps:$4 sm:$0xff]  }
   0x7   :  { %407 = vmatpush3.bf16.msra.mxu0 %v447_v3  ;;  %438 = vmatprep.subr.bf16.mxu1 %v459_v11  ;;  %v458_v18 = vld [vmem:[%s592_s0 + $0x30] sm:$0xff]   ;;  %v460_v19 = vld [vmem:[%s592_s0 + $0x78] sm:$0xff]   ;;  %v463_v21 = vld [vmem:[%s593_s1] ss:$12 sps:$4 sm:$0xff]  }
   0x8   :  { %408 = vmatprep.subr.bf16.mxu0 %v448_v4  ;;  %440 = vmatprep.mubr.msk.bf16.mxu1 %vm196_vm0, %v462_v14  ;;  %v461_v20 = vld [vmem:[%s592_s0 + $0x38] sm:$0xff]  }
   0x9   :  { %235 = vmatprep.mubr.bf16.mxu0 %v465_v16  ;;  %v467_v22 = vld [vmem:[%s593_s1 + $0x1c] ss:$12 sps:$4 sm:$0xff]   ;;  %v469_v23 = vld [vmem:[%s593_s1 + $0x18] ss:$12 sps:$4 sm:$0xff]  }
   0xa   :  { %439 = vmatpush3.bf16.msra.mxu1 %v459_v11 }
   0xb   :  { %409 = vmatpush3.bf16.msra.mxu0 %v449_v5 }
   0xc   :  { %410 = vmatprep.subr.bf16.mxu0 %v450_v6 }
   0xd   :  { %441 = vmatmul.mubr.msk.bf16.vlgmr.msra.gmra.mrb[0].mxu1 %vm196_vm0, %v466_v17 }
   0xf   :  { %411 = vmatpush3.bf16.msra.mxu0 %v451_v7 }
  0x10   :  { %412 = vmatprep.subr.bf16.mxu0 %v452_v8 }
  0x13   :  { %413 = vmatpush3.bf16.msra.mxu0 %v453_v10 }
  0x14   :  { %414 = vmatprep.subr.bf16.mxu0 %v454_v12 }
  0x17   :  { %415 = vmatpush3.bf16.msra.mxu0 %v455_v13 }
  0x18   :  { %416 = vmatprep.subr.bf16.mxu0 %v457_v15 }
  0x1b   :  { %417 = vmatpush3.bf16.msra.mxu0 %v458_v18 }
  0x1c   :  { %418 = vmatprep.subr.bf16.mxu0 %v460_v19 }
  0x1f   :  { %419 = vmatpush3.bf16.msra.mxu0 %v461_v20 }
  0x22   :  { %236 = vmatmul.mubr.bf16.vlgmr.msra.gmra.mrb[0].mxu0 %v463_v21 }
  0x23   :  { %243 = vmatprep.mubr.bf16.mxu0 %v467_v22 }
  0x2a   :  { %244 = vmatmul.mubr.bf16.gmra.mrb[4].mxu0 %v469_v23 }
  0xe0   :  { %v442_v24 = vpop.f32.mrb[0].mxu1 }
  0xe1   :  { %v286_v25 = vpop.f32.mrb[1].mxu1 }
  0xe2   :  { %v443_v26 = vpop.f32.mrb[2].mxu1 }
  0xe3   :  { %v289_v27 = vpop.f32.mrb[3].mxu1 }
  0xf5   :  { %v420_v28 = vpop.f32.mrb[0].mxu0 }
  0xf6   :  { %v421_v29 = vpop.f32.mrb[1].mxu0 }
  0xf7   :  { %v422_v30 = vadd.f32 %v421_v29, %v420_v28  ;;  %v423_v31 = vpop.f32.mrb[2].mxu0 }
  0xf8   :  { %v424_v32 = vpop.f32.mrb[3].mxu0 }
  0xf9   :  { %v287_v33 = vadd.f32 %v422_v30, %v286_v25  ;;  %v425_v34 = vadd.f32 %v424_v32, %v423_v31 }
  0xfb   :  { %v290_v35 = vadd.f32 %v425_v34, %v289_v27  ;;  %321 = vadd.xlane.f32.xlu0 %v287_v33  ;;  %v334_v45 = vmul.f32 %v287_v33, %v287_v33 }
  0xfd   :  { %v396_v36 = vpack.c.bf16 %v290_v35, %v287_v33  ;;  %v426_v37 = vpop.f32.mrb[4].mxu0  ;;  %v335_v38 = vmul.f32 %v290_v35, %v290_v35 }
  0xfe   :  { %v427_v39 = vpop.f32.mrb[5].mxu0 }
  0xff   :  { %397 = vst [vmem:[%s594_s2] sm:$0xff] %v396_v36   ;;  %v428_v40 = vadd.f32 %v427_v39, %v426_v37  ;;  %v429_v41 = vpop.f32.mrb[6].mxu0  ;;  %340 = vadd.xlane.f32.xlu1 %v335_v38  ;;  %323 = vadd.xlane.f32.xlu0 %v290_v35 }
 0x100   :  { %v430_v42 = vpop.f32.mrb[7].mxu0 }
 0x101   :  { %v295_v43 = vadd.f32 %v442_v24, %v428_v40  ;;  %v431_v44 = vadd.f32 %v430_v42, %v429_v41 }
 0x103   :  { %v298_v46 = vadd.f32 %v443_v26, %v431_v44  ;;  %325 = vadd.xlane.f32.xlu1 %v295_v43  ;;  %338 = vadd.xlane.f32.xlu0 %v334_v45  ;;  %v336_v48 = vmul.f32 %v295_v43, %v295_v43 }
 0x105   :  { %v401_v47 = vpack.c.bf16 %v298_v46, %v295_v43  ;;  %v337_v49 = vmul.f32 %v298_v46, %v298_v46 }
 0x107   :  { %403 = vst [vmem:[%s594_s2 + $0x8] sm:$0xff] %v401_v47   ;;  %327 = vadd.xlane.f32.xlu1 %v298_v46  ;;  %342 = vadd.xlane.f32.xlu0 %v336_v48 }
 0x10b   :  { %344 = vadd.xlane.f32.xlu1 %v337_v49 }
 0x188   :  { %v322_v50 = vpop.xlane.xlu0 %321 }
 0x189   :  { %330 = vst.msk [vmem:[%s595_s3] sm:$0xff] %vm329_vm1, %v322_v50 }
 0x18c   :  { %v341_v51 = vpop.xlane.xlu1 %340  ;;  %v324_v52 = vpop.xlane.xlu0 %323 }
 0x18d   :  { %331 = vst.msk [vmem:[%s595_s3 + $0x8] sm:$0xff] %vm329_vm1, %v324_v52 }
 0x18e   :  { %348 = vst.msk [vmem:[%s595_s3 + $0x8] sm:$0xff] %vm346_vm2, %v341_v51 }
 0x190   :  { %v326_v53 = vpop.xlane.xlu1 %325  ;;  %v339_v54 = vpop.xlane.xlu0 %338 }
 0x191   :  { %332 = vst.msk [vmem:[%s595_s3 + $0x10] sm:$0xff] %vm329_vm1, %v326_v53 }
 0x192   :  { %347 = vst.msk [vmem:[%s595_s3] sm:$0xff] %vm346_vm2, %v339_v54 }
 0x194   :  { %v328_v55 = vpop.xlane.xlu1 %327  ;;  %v343_v56 = vpop.xlane.xlu0 %342 }
 0x195   :  { %333 = vst.msk [vmem:[%s595_s3 + $0x18] sm:$0xff] %vm329_vm1, %v328_v55 }
 0x196   :  { %349 = vst.msk [vmem:[%s595_s3 + $0x10] sm:$0xff] %vm346_vm2, %v343_v56 }
 0x198   :  { %v345_v57 = vpop.xlane.xlu1 %344 }
 0x199   :  { %350 = vst.msk [vmem:[%s595_s3 + $0x18] sm:$0xff] %vm346_vm2, %v345_v57 }

// kernel: forward.33
= control target key start
LH: loop header
LB: loop body
LE: loop exit
PB: predicated region body
PF: predicated region fallthrough
CT: control target
= control target key end

     0   :  { %vm234_vm0 = vcmask 261120   ;;  %vm433_vm1 = vcmask 7168   ;;  %vm466_vm2 = vcmask 15368   ;;  %s854_s0 = inlined_call_operand.vmem [shape: bf16[288,128], index: 0, kind: input, shape index: {}]   ;;  %s855_s1 = inlined_call_operand.vmem [shape: bf16[64,288], index: 1, kind: input, shape index: {}]   ;;  %s856_s2 = inlined_call_operand.vmem [shape: bf16[64,128], index: 2, kind: output, shape index: {0}]   ;;  %s857_s3 = inlined_call_operand.vmem [shape: f32[1,64,2], index: 3, kind: output, shape index: {1}]  }
   0x1   :  { %v630_v0 = vld [vmem:[%s854_s0 + $0x40] sm:$0xff]   ;;  %v632_v2 = vld [vmem:[%s854_s0 + $0x48] sm:$0xff]   ;;  %v634_v4 = vld [vmem:[%s854_s0 + $0x50] sm:$0xff]  }
   0x2   :  { %v631_v1 = vld [vmem:[%s854_s0] sm:$0xff]   ;;  %556 = vmatprep.subr.bf16.mxu0 %v630_v0  ;;  %614 = vmatprep.subr.bf16.mxu1 %v630_v0  ;;  %v633_v3 = vld [vmem:[%s854_s0 + $0x8] sm:$0xff]   ;;  %v635_v5 = vld [vmem:[%s854_s0 + $0x10] sm:$0xff]  }
   0x3   :  { %557 = vmatpush3.bf16.msra.mxu0 %v631_v1  ;;  %622 = vmatpush3.bf16.msra.mxu1 %v631_v1  ;;  %v636_v6 = vld [vmem:[%s854_s0 + $0x58] sm:$0xff]   ;;  %v638_v8 = vld [vmem:[%s854_s0 + $0x60] sm:$0xff]   ;;  %v640_v10 = vld [vmem:[%s854_s0 + $0x68] sm:$0xff]  }
   0x4   :  { %558 = vmatprep.subr.bf16.mxu0 %v632_v2  ;;  %615 = vmatprep.subr.bf16.mxu1 %v632_v2  ;;  %v637_v7 = vld [vmem:[%s854_s0 + $0x18] sm:$0xff]   ;;  %v639_v9 = vld [vmem:[%s854_s0 + $0x20] sm:$0xff]   ;;  %v641_v13 = vld [vmem:[%s854_s0 + $0x28] sm:$0xff]  }
   0x5   :  { %v648_v11 = vld [vmem:[%s855_s1 + $0x4] ss:$12 sps:$4 sm:$0xff]   ;;  %v651_v12 = vld [vmem:[%s855_s1 + $0x4c] ss:$12 sps:$4 sm:$0xff]   ;;  %v649_v20 = vld [vmem:[%s855_s1 + $0x48] ss:$12 sps:$4 sm:$0xff]  }
   0x6   :  { %v642_v14 = vld [vmem:[%s854_s0 + $0x70] sm:$0xff]   ;;  %279 = vmatprep.mubr.bf16.mxu0 %v648_v11  ;;  %303 = vmatprep.mubr.bf16.mxu1 %v651_v12  ;;  %v644_v16 = vld [vmem:[%s854_s0 + $0x78] sm:$0xff]   ;;  %v652_v18 = vld [vmem:[%s854_s0 + $0x80] sm:$0xff]  }
   0x7   :  { %559 = vmatpush3.bf16.msra.mxu0 %v633_v3  ;;  %623 = vmatpush3.bf16.msra.mxu1 %v633_v3  ;;  %v643_v15 = vld [vmem:[%s854_s0 + $0x30] sm:$0xff]   ;;  %v645_v17 = vld [vmem:[%s854_s0 + $0x38] sm:$0xff]   ;;  %v646_v19 = vld [vmem:[%s855_s1] ss:$12 sps:$4 sm:$0xff]  }
   0x8   :  { %560 = vmatprep.subr.bf16.mxu0 %v634_v4  ;;  %616 = vmatprep.subr.bf16.mxu1 %v634_v4  ;;  %v654_v21 = vld [vmem:[%s855_s1 + $0x1c] ss:$12 sps:$4 sm:$0xff]   ;;  %v657_v24 = vld [vmem:[%s855_s1 + $0x18] ss:$12 sps:$4 sm:$0xff]   ;;  %v658_v25 = vld [vmem:[%s855_s1 + $0x20] ss:$12 sps:$4 sm:$0xff]  }
   0x9   :  { %v653_v22 = vld [vmem:[%s854_s0 + $0x88] sm:$0xff]   ;;  %v659_v26 = vld [vmem:[%s855_s1 + $0x38] ss:$12 sps:$4 sm:$0xff]   ;;  %v661_v27 = vld [vmem:[%s855_s1 + $0x34] ss:$12 sps:$4 sm:$0xff]  }
   0xa   :  { %v656_v23 = vld [vmem:[%s855_s1 + $0x8] ss:$12 sps:$4 sm:$0xff]   ;;  %v660_v28 = vld [vmem:[%s855_s1 + $0x50] ss:$12 sps:$4 sm:$0xff]  }
   0xb   :  { %561 = vmatpush3.bf16.msra.mxu0 %v635_v5  ;;  %624 = vmatpush3.bf16.msra.mxu1 %v635_v5  ;;  %v663_v29 = vld [vmem:[%s855_s1 + $0x30] ss:$12 sps:$4 sm:$0xff]  }
   0xc   :  { %562 = vmatprep.subr.bf16.mxu0 %v636_v6  ;;  %617 = vmatprep.subr.bf16.mxu1 %v636_v6 }
   0xf   :  { %563 = vmatpush3.bf16.msra.mxu0 %v637_v7  ;;  %625 = vmatpush3.bf16.msra.mxu1 %v637_v7 }
  0x10   :  { %564 = vmatprep.subr.bf16.mxu0 %v638_v8  ;;  %618 = vmatprep.subr.bf16.mxu1 %v638_v8 }
  0x13   :  { %565 = vmatpush3.bf16.msra.mxu0 %v639_v9  ;;  %626 = vmatpush3.bf16.msra.mxu1 %v639_v9 }
  0x14   :  { %566 = vmatprep.subr.bf16.mxu0 %v640_v10  ;;  %619 = vmatprep.subr.bf16.mxu1 %v640_v10 }
  0x17   :  { %567 = vmatpush3.bf16.msra.mxu0 %v641_v13  ;;  %627 = vmatpush3.bf16.msra.mxu1 %v641_v13 }
  0x18   :  { %568 = vmatprep.subr.bf16.mxu0 %v642_v14  ;;  %620 = vmatprep.subr.bf16.mxu1 %v642_v14 }
  0x1b   :  { %569 = vmatpush3.bf16.msra.mxu0 %v643_v15  ;;  %628 = vmatpush3.bf16.msra.mxu1 %v643_v15 }
  0x1c   :  { %570 = vmatprep.subr.bf16.mxu0 %v644_v16  ;;  %621 = vmatprep.subr.bf16.mxu1 %v644_v16 }
  0x1f   :  { %571 = vmatpush3.bf16.msra.mxu0 %v645_v17  ;;  %629 = vmatpush3.bf16.msra.mxu1 %v645_v17 }
  0x20   :  { %602 = vmatprep.subr.bf16.mxu1 %v652_v18 }
  0x22   :  { %280 = vmatmul.mubr.bf16.vlgmr.msra.gmra.mrb[0].mxu0 %v646_v19  ;;  %304 = vmatmul.mubr.bf16.vlgmr.msra.gmra.mrb[0].mxu1 %v649_v20 }
  0x23   :  { %603 = vmatpush3.bf16.msra.mxu1 %v652_v18  ;;  %287 = vmatprep.mubr.bf16.mxu0 %v654_v21 }
  0x24   :  { %604 = vmatprep.subr.bf16.mxu1 %v653_v22  ;;  %606 = vmatprep.mubr.msk.bf16.mxu1 %vm234_vm0, %v656_v23 }
  0x27   :  { %605 = vmatpush3.bf16.msra.mxu1 %v653_v22 }
  0x2a   :  { %288 = vmatmul.mubr.bf16.gmra.mrb[4].mxu0 %v657_v24  ;;  %607 = vmatmul.mubr.msk.bf16.vlgmr.msra.gmra.mrb[4].mxu1 %vm234_vm0, %v658_v25 }
  0x2b   :  { %610 = vmatprep.mubr.msk.bf16.mxu1 %vm234_vm0, %v659_v26  ;;  %295 = vmatprep.mubr.bf16.mxu0 %v661_v27 }
  0x32   :  { %611 = vmatmul.mubr.msk.bf16.gmra.mrb[8].mxu1 %vm234_vm0, %v660_v28  ;;  %296 = vmatmul.mubr.bf16.gmra.mrb[8].mxu0 %v663_v29 }
  0xf5   :  { %v572_v30 = vpop.f32.mrb[0].mxu0  ;;  %v590_v31 = vpop.f32.mrb[0].mxu1 }
  0xf6   :  { %v573_v32 = vpop.f32.mrb[1].mxu0  ;;  %v591_v33 = vpop.f32.mrb[1].mxu1 }
  0xf7   :  { %v574_v34 = vadd.f32 %v573_v32, %v572_v30  ;;  %v592_v35 = vadd.f32 %v591_v33, %v590_v31  ;;  %v575_v36 = vpop.f32.mrb[2].mxu0  ;;  %v593_v37 = vpop.f32.mrb[2].mxu1 }
  0xf8   :  { %v576_v38 = vpop.f32.mrb[3].mxu0  ;;  %v594_v39 = vpop.f32.mrb[3].mxu1 }
  0xf9   :  { %v577_v40 = vadd.f32 %v576_v38, %v575_v36  ;;  %v595_v41 = vadd.f32 %v594_v39, %v593_v37 }
  0xfd   :  { %v578_v42 = vpop.f32.mrb[4].mxu0  ;;  %v608_v43 = vpop.f32.mrb[4].mxu1 }
  0xfe   :  { %v579_v44 = vpop.f32.mrb[5].mxu0  ;;  %v346_v45 = vpop.f32.mrb[5].mxu1 }
  0xff   :  { %v580_v46 = vadd.f32 %v579_v44, %v578_v42  ;;  %v347_v47 = vadd.f32 %v574_v34, %v346_v45  ;;  %v581_v48 = vpop.f32.mrb[6].mxu0  ;;  %v609_v49 = vpop.f32.mrb[6].mxu1 }
 0x100   :  { %v582_v50 = vpop.f32.mrb[7].mxu0  ;;  %v349_v51 = vpop.f32.mrb[7].mxu1 }
 0x101   :  { %v355_v52 = vadd.f32 %v608_v43, %v580_v46  ;;  %v583_v53 = vadd.f32 %v582_v50, %v581_v48  ;;  %v350_v54 = vadd.f32 %v577_v40, %v349_v51  ;;  %417 = vadd.xlane.f32.xlu0 %v347_v47  ;;  %v442_v0 = vmul.f32 %v347_v47, %v347_v47 }
 0x103   :  { %v358_v55 = vadd.f32 %v609_v49, %v583_v53  ;;  %v536_v56 = vpack.c.bf16 %v350_v54, %v347_v47  ;;  %421 = vadd.xlane.f32.xlu1 %v355_v52  ;;  %v443_v7 = vmul.f32 %v350_v54, %v350_v54  ;;  %v444_v10 = vmul.f32 %v355_v52, %v355_v52 }
 0x105   :  { %v541_v57 = vpack.c.bf16 %v358_v55, %v355_v52  ;;  %537 = vst [vmem:[%s856_s2] sm:$0xff] %v536_v56   ;;  %v612_v58 = vpop.f32.mrb[8].mxu1  ;;  %419 = vadd.xlane.f32.xlu0 %v350_v54  ;;  %v584_v59 = vpop.f32.mrb[8].mxu0  ;;  %v445_v13 = vmul.f32 %v358_v55, %v358_v55 }
 0x106   :  { %v371_v60 = vadd.f32 %v612_v58, %v592_v35  ;;  %v362_v61 = vpop.f32.mrb[9].mxu1  ;;  %v585_v62 = vpop.f32.mrb[9].mxu0 }
 0x107   :  { %553 = vst [vmem:[%s856_s2 + $0x8] sm:$0xff] %v541_v57   ;;  %v613_v63 = vpop.f32.mrb[10].mxu1  ;;  %423 = vadd.xlane.f32.xlu1 %v358_v55  ;;  %v586_v1 = vadd.f32 %v585_v62, %v584_v59  ;;  %v587_v2 = vpop.f32.mrb[10].mxu0 }
 0x108   :  { %v374_v3 = vadd.f32 %v613_v63, %v595_v41  ;;  %v588_v4 = vpop.f32.mrb[11].mxu0  ;;  %v365_v5 = vpop.f32.mrb[11].mxu1  ;;  %v448_v16 = vmul.f32 %v371_v60, %v371_v60 }
 0x109   :  { %450 = vadd.xlane.f32.xlu0 %v442_v0  ;;  %v363_v6 = vadd.f32 %v586_v1, %v362_v61  ;;  %v589_v8 = vadd.f32 %v588_v4, %v587_v2 }
 0x10a   :  { %v551_v9 = vpack.c.bf16 %v374_v3, %v371_v60  ;;  %v449_v17 = vmul.f32 %v374_v3, %v374_v3 }
 0x10b   :  { %452 = vadd.xlane.f32.xlu1 %v443_v7  ;;  %v366_v11 = vadd.f32 %v589_v8, %v365_v5  ;;  %v446_v14 = vmul.f32 %v363_v6, %v363_v6 }
 0x10c   :  { %555 = vst [vmem:[%s856_s2 + $0x18] sm:$0xff] %v551_v9  }
 0x10d   :  { %454 = vadd.xlane.f32.xlu0 %v444_v10  ;;  %v546_v12 = vpack.c.bf16 %v366_v11, %v363_v6  ;;  %v447_v15 = vmul.f32 %v366_v11, %v366_v11 }
 0x10f   :  { %554 = vst [vmem:[%s856_s2 + $0x10] sm:$0xff] %v546_v12   ;;  %456 = vadd.xlane.f32.xlu1 %v445_v13 }
 0x111   :  { %429 = vadd.xlane.f32.xlu0 %v371_v60 }
 0x113   :  { %431 = vadd.xlane.f32.xlu1 %v374_v3 }
 0x115   :  { %425 = vadd.xlane.f32.xlu0 %v363_v6 }
 0x117   :  { %427 = vadd.xlane.f32.xlu1 %v366_v11 }
 0x119   :  { %458 = vadd.xlane.f32.xlu0 %v446_v14 }
 0x11b   :  { %460 = vadd.xlane.f32.xlu1 %v447_v15 }
 0x11d   :  { %462 = vadd.xlane.f32.xlu0 %v448_v16 }
 0x11f   :  { %464 = vadd.xlane.f32.xlu1 %v449_v17 }
 0x18e   :  { %v418_v18 = vpop.xlane.xlu0 %417 }
 0x18f   :  { %434 = vst.msk [vmem:[%s857_s3] sm:$0xff] %vm433_vm1, %v418_v18 }
 0x190   :  { %v422_v19 = vpop.xlane.xlu1 %421 }
 0x191   :  { %436 = vst.msk [vmem:[%s857_s3 + $0x10] sm:$0xff] %vm433_vm1, %v422_v19 }
 0x192   :  { %v420_v20 = vpop.xlane.xlu0 %419 }
 0x193   :  { %435 = vst.msk [vmem:[%s857_s3 + $0x8] sm:$0xff] %vm433_vm1, %v420_v20 }
 0x194   :  { %v424_v21 = vpop.xlane.xlu1 %423 }
 0x195   :  { %437 = vst.msk [vmem:[%s857_s3 + $0x18] sm:$0xff] %vm433_vm1, %v424_v21 }
 0x196   :  { %v451_v22 = vpop.xlane.xlu0 %450 }
 0x197   :  { %467 = vst.msk [vmem:[%s857_s3] sm:$0xff] %vm466_vm2, %v451_v22 }
 0x198   :  { %v453_v23 = vpop.xlane.xlu1 %452 }
 0x199   :  { %468 = vst.msk [vmem:[%s857_s3 + $0x8] sm:$0xff] %vm466_vm2, %v453_v23 }
 0x19a   :  { %v455_v24 = vpop.xlane.xlu0 %454 }
 0x19b   :  { %469 = vst.msk [vmem:[%s857_s3 + $0x10] sm:$0xff] %vm466_vm2, %v455_v24 }
 0x19c   :  { %v457_v25 = vpop.xlane.xlu1 %456 }
 0x19d   :  { %470 = vst.msk [vmem:[%s857_s3 + $0x18] sm:$0xff] %vm466_vm2, %v457_v25 }
 0x19e   :  { %v430_v26 = vpop.xlane.xlu0 %429 }
 0x19f   :  { %440 = vst.msk [vmem:[%s857_s3 + $0x30] sm:$0xff] %vm433_vm1, %v430_v26 }
 0x1a0   :  { %v432_v27 = vpop.xlane.xlu1 %431 }
 0x1a1   :  { %441 = vst.msk [vmem:[%s857_s3 + $0x38] sm:$0xff] %vm433_vm1, %v432_v27 }
 0x1a2   :  { %v426_v28 = vpop.xlane.xlu0 %425 }
 0x1a3   :  { %438 = vst.msk [vmem:[%s857_s3 + $0x20] sm:$0xff] %vm433_vm1, %v426_v28 }
 0x1a4   :  { %v428_v29 = vpop.xlane.xlu1 %427 }
 0x1a5   :  { %439 = vst.msk [vmem:[%s857_s3 + $0x28] sm:$0xff] %vm433_vm1, %v428_v29 }
 0x1a6   :  { %v459_v30 = vpop.xlane.xlu0 %458 }
 0x1a7   :  { %471 = vst.msk [vmem:[%s857_s3 + $0x20] sm:$0xff] %vm466_vm2, %v459_v30 }
 0x1a8   :  { %v461_v31 = vpop.xlane.xlu1 %460 }
 0x1a9   :  { %472 = vst.msk [vmem:[%s857_s3 + $0x28] sm:$0xff] %vm466_vm2, %v461_v31 }
 0x1aa   :  { %v463_v32 = vpop.xlane.xlu0 %462 }
 0x1ab   :  { %473 = vst.msk [vmem:[%s857_s3 + $0x30] sm:$0xff] %vm466_vm2, %v463_v32 }
 0x1ac   :  { %v465_v33 = vpop.xlane.xlu1 %464 }
 0x1ad   :  { %474 = vst.msk [vmem:[%s857_s3 + $0x38] sm:$0xff] %vm466_vm2, %v465_v33 }

// kernel: forward.34
= control target key start
LH: loop header
LB: loop body
LE: loop exit
PB: predicated region body
PF: predicated region fallthrough
CT: control target
= control target key end

     0   :  { %vm426_vm0 = vcmask 523264   ;;  %vm690_vm1 = vcmask 7168   ;;  %vm723_vm2 = vcmask 15368   ;;  %s1279_s0 = inlined_call_operand.vmem [shape: bf16[576,128], index: 0, kind: input, shape index: {}]   ;;  %s1280_s1 = inlined_call_operand.vmem [shape: bf16[64,576], index: 1, kind: input, shape index: {}]   ;;  %s1281_s2 = inlined_call_operand.vmem [shape: bf16[64,128], index: 2, kind: output, shape index: {0}]   ;;  %s1282_s3 = inlined_call_operand.vmem [shape: f32[1,64,2], index: 3, kind: output, shape index: {1}]  }
   0x1   :  { %v951_v0 = vld [vmem:[%s1279_s0 + $0x40] sm:$0xff]   ;;  %v955_v4 = vld [vmem:[%s1279_s0 + $0x48] sm:$0xff]   ;;  %v959_v8 = vld [vmem:[%s1279_s0 + $0x50] sm:$0xff]  }
   0x2   :  { %v952_v1 = vld [vmem:[%s1279_s0 + $0xc0] sm:$0xff]   ;;  %839 = vmatprep.subr.bf16.mxu0 %v951_v0  ;;  %v956_v5 = vld [vmem:[%s1279_s0 + $0xc8] sm:$0xff]   ;;  %v960_v9 = vld [vmem:[%s1279_s0 + $0xd0] sm:$0xff]  }
   0x3   :  { %v953_v2 = vld [vmem:[%s1279_s0] sm:$0xff]   ;;  %879 = vmatprep.subr.bf16.mxu1 %v952_v1  ;;  %v957_v6 = vld [vmem:[%s1279_s0 + $0x8] sm:$0xff]   ;;  %v961_v10 = vld [vmem:[%s1279_s0 + $0x10] sm:$0xff]  }
   0x4   :  { %v954_v3 = vld [vmem:[%s1279_s0 + $0x80] sm:$0xff]   ;;  %840 = vmatpush3.bf16.msra.mxu0 %v953_v2  ;;  %v958_v7 = vld [vmem:[%s1279_s0 + $0x88] sm:$0xff]   ;;  %v962_v11 = vld [vmem:[%s1279_s0 + $0x90] sm:$0xff]  }
   0x5   :  { %880 = vmatpush3.bf16.msra.mxu1 %v954_v3  ;;  %841 = vmatprep.subr.bf16.mxu0 %v955_v4  ;;  %v963_v12 = vld [vmem:[%s1279_s0 + $0x58] sm:$0xff]   ;;  %v967_v16 = vld [vmem:[%s1279_s0 + $0x60] sm:$0xff]   ;;  %v971_v20 = vld [vmem:[%s1279_s0 + $0x68] sm:$0xff]  }
   0x6   :  { %881 = vmatprep.subr.bf16.mxu1 %v956_v5  ;;  %v964_v13 = vld [vmem:[%s1279_s0 + $0xd8] sm:$0xff]   ;;  %v968_v17 = vld [vmem:[%s1279_s0 + $0xe0] sm:$0xff]   ;;  %v972_v21 = vld [vmem:[%s1279_s0 + $0xe8] sm:$0xff]  }
   0x7   :  { %v965_v14 = vld [vmem:[%s1279_s0 + $0x18] sm:$0xff]   ;;  %v969_v18 = vld [vmem:[%s1279_s0 + $0x20] sm:$0xff]   ;;  %v973_v22 = vld [vmem:[%s1279_s0 + $0x28] sm:$0xff]  }
   0x8   :  { %842 = vmatpush3.bf16.msra.mxu0 %v957_v6  ;;  %v966_v15 = vld [vmem:[%s1279_s0 + $0x98] sm:$0xff]   ;;  %v970_v19 = vld [vmem:[%s1279_s0 + $0xa0] sm:$0xff]   ;;  %v974_v23 = vld [vmem:[%s1279_s0 + $0xa8] sm:$0xff]  }
   0x9   :  { %882 = vmatpush3.bf16.msra.mxu1 %v958_v7  ;;  %843 = vmatprep.subr.bf16.mxu0 %v959_v8  ;;  %v975_v24 = vld [vmem:[%s1279_s0 + $0x70] sm:$0xff]   ;;  %v979_v28 = vld [vmem:[%s1279_s0 + $0x78] sm:$0xff]   ;;  %v988_v35 = vld [vmem:[%s1280_s1 + $0xc] ss:$20 sps:$4 sm:$0xff]  }
   0xa   :  { %883 = vmatprep.subr.bf16.mxu1 %v960_v9  ;;  %v976_v25 = vld [vmem:[%s1279_s0 + $0xf0] sm:$0xff]   ;;  %v980_v29 = vld [vmem:[%s1279_s0 + $0xf8] sm:$0xff]   ;;  %v989_v36 = vld [vmem:[%s1279_s0 + $0x100] sm:$0xff]   ;;  %536 = vmatprep.mubr.bf16.mxu1 %v988_v35 }
   0xb   :  { %v977_v26 = vld [vmem:[%s1279_s0 + $0x30] sm:$0xff]   ;;  %v981_v30 = vld [vmem:[%s1279_s0 + $0x38] sm:$0xff]   ;;  %v990_v37 = vld [vmem:[%s1280_s1 + $0x2c] ss:$20 sps:$4 sm:$0xff]  }
   0xc   :  { %844 = vmatpush3.bf16.msra.mxu0 %v961_v10  ;;  %v978_v27 = vld [vmem:[%s1279_s0 + $0xb0] sm:$0xff]   ;;  %v982_v31 = vld [vmem:[%s1279_s0 + $0xb8] sm:$0xff]   ;;  %v996_v39 = vld [vmem:[%s1279_s0 + $0x108] sm:$0xff]  }
   0xd   :  { %884 = vmatpush3.bf16.msra.mxu1 %v962_v11  ;;  %845 = vmatprep.subr.bf16.mxu0 %v963_v12  ;;  %v983_v32 = vld [vmem:[%s1280_s1] ss:$20 sps:$4 sm:$0xff]   ;;  %v985_v33 = vld [vmem:[%s1280_s1 + $0x4] ss:$20 sps:$4 sm:$0xff]   ;;  %v986_v34 = vld [vmem:[%s1280_s1 + $0x8] ss:$20 sps:$4 sm:$0xff]  }
   0xe   :  { %885 = vmatprep.subr.bf16.mxu1 %v964_v13  ;;  %471 = vmatprep.mubr.bf16.mxu0 %v985_v33  ;;  %v992_v38 = vld [vmem:[%s1280_s1 + $0x34] ss:$20 sps:$4 sm:$0xff]   ;;  %v995_v41 = vld [vmem:[%s1280_s1 + $0x30] ss:$20 sps:$4 sm:$0xff]   ;;  %v1010_v45 = vld [vmem:[%s1279_s0 + $0x118] sm:$0xff]  }
   0xf   :  { %v994_v40 = vld [vmem:[%s1280_s1 + $0x28] ss:$20 sps:$4 sm:$0xff]   ;;  %v1003_v44 = vld [vmem:[%s1279_s0 + $0x110] sm:$0xff]   ;;  %v1002_v47 = vld [vmem:[%s1280_s1 + $0x58] ss:$20 sps:$4 sm:$0xff]  }
  0x10   :  { %846 = vmatpush3.bf16.msra.mxu0 %v965_v14  ;;  %v997_v42 = vld [vmem:[%s1280_s1 + $0x54] ss:$20 sps:$4 sm:$0xff]   ;;  %v999_v43 = vld [vmem:[%s1280_s1 + $0x5c] ss:$20 sps:$4 sm:$0xff]   ;;  %v1006_v49 = vld [vmem:[%s1280_s1 + $0x84] ss:$20 sps:$4 sm:$0xff]  }
  0x11   :  { %886 = vmatpush3.bf16.msra.mxu1 %v966_v15  ;;  %847 = vmatprep.subr.bf16.mxu0 %v967_v16  ;;  %v1001_v46 = vld [vmem:[%s1280_s1 + $0x50] ss:$20 sps:$4 sm:$0xff]   ;;  %v1008_v50 = vld [vmem:[%s1280_s1 + $0x78] ss:$20 sps:$4 sm:$0xff]   ;;  %v1009_v51 = vld [vmem:[%s1280_s1 + $0x80] ss:$20 sps:$4 sm:$0xff]  }
  0x12   :  { %887 = vmatprep.subr.bf16.mxu1 %v968_v17  ;;  %v1004_v48 = vld [vmem:[%s1280_s1 + $0x7c] ss:$20 sps:$4 sm:$0xff]   ;;  %v1012_v53 = vld [vmem:[%s1280_s1 + $0x60] ss:$20 sps:$4 sm:$0xff]   ;;  %v1013_v54 = vld [vmem:[%s1280_s1 + $0x38] ss:$20 sps:$4 sm:$0xff]  }
  0x13   :  { %v1011_v52 = vld [vmem:[%s1280_s1 + $0x10] ss:$20 sps:$4 sm:$0xff]   ;;  %v1014_v55 = vld [vmem:[%s1280_s1 + $0x88] ss:$20 sps:$4 sm:$0xff]  }
  0x14   :  { %848 = vmatpush3.bf16.msra.mxu0 %v969_v18 }
  0x15   :  { %888 = vmatpush3.bf16.msra.mxu1 %v970_v19  ;;  %849 = vmatprep.subr.bf16.mxu0 %v971_v20 }
  0x16   :  { %889 = vmatprep.subr.bf16.mxu1 %v972_v21 }
  0x18   :  { %850 = vmatpush3.bf16.msra.mxu0 %v973_v22 }
  0x19   :  { %890 = vmatpush3.bf16.msra.mxu1 %v974_v23  ;;  %851 = vmatprep.subr.bf16.mxu0 %v975_v24 }
  0x1a   :  { %891 = vmatprep.subr.bf16.mxu1 %v976_v25 }
  0x1c   :  { %852 = vmatpush3.bf16.msra.mxu0 %v977_v26 }
  0x1d   :  { %892 = vmatpush3.bf16.msra.mxu1 %v978_v27  ;;  %853 = vmatprep.subr.bf16.mxu0 %v979_v28 }
  0x1e   :  { %893 = vmatprep.subr.bf16.mxu1 %v980_v29 }
  0x20   :  { %854 = vmatpush3.bf16.msra.mxu0 %v981_v30 }
  0x21   :  { %894 = vmatpush3.bf16.msra.mxu1 %v982_v31  ;;  %927 = vmatprep.subr.bf16.mxu0 %v989_v36 }
  0x22   :  { %943 = vmatprep.subr.bf16.mxu1 %v989_v36 }
  0x23   :  { %472 = vmatmul.mubr.bf16.vlgmr.msra.gmra.mrb[0].mxu0 %v983_v32 }
  0x24   :  { %537 = vmatmul.mubr.bf16.vlgmr.msra.gmra.mrb[0].mxu1 %v986_v34  ;;  %928 = vmatpush3.bf16.msra.mxu0 %v989_v36 }
  0x25   :  { %947 = vmatpush3.bf16.msra.mxu1 %v989_v36  ;;  %479 = vmatprep.mubr.bf16.mxu0 %v990_v37 }
  0x26   :  { %544 = vmatprep.mubr.bf16.mxu1 %v992_v38  ;;  %929 = vmatprep.subr.bf16.mxu0 %v996_v39 }
  0x27   :  { %944 = vmatprep.subr.bf16.mxu1 %v996_v39 }
  0x28   :  { %930 = vmatpush3.bf16.msra.mxu0 %v996_v39 }
  0x29   :  { %948 = vmatpush3.bf16.msra.mxu1 %v996_v39  ;;  %931 = vmatprep.subr.bf16.mxu0 %v1003_v44 }
  0x2a   :  { %945 = vmatprep.subr.bf16.mxu1 %v1003_v44 }
  0x2b   :  { %480 = vmatmul.mubr.bf16.gmra.mrb[4].mxu0 %v994_v40 }
  0x2c   :  { %545 = vmatmul.mubr.bf16.gmra.mrb[4].mxu1 %v995_v41  ;;  %487 = vmatprep.mubr.bf16.mxu0 %v997_v42 }
  0x2d   :  { %552 = vmatprep.mubr.bf16.mxu1 %v999_v43  ;;  %932 = vmatpush3.bf16.msra.mxu0 %v1003_v44 }
  0x2e   :  { %949 = vmatpush3.bf16.msra.mxu1 %v1003_v44  ;;  %933 = vmatprep.subr.bf16.mxu0 %v1010_v45 }
  0x2f   :  { %946 = vmatprep.subr.bf16.mxu1 %v1010_v45 }
  0x31   :  { %934 = vmatpush3.bf16.msra.mxu0 %v1010_v45 }
  0x32   :  { %950 = vmatpush3.bf16.msra.mxu1 %v1010_v45 }
  0x33   :  { %488 = vmatmul.mubr.bf16.gmra.mrb[8].mxu0 %v1001_v46 }
  0x34   :  { %553 = vmatmul.mubr.bf16.gmra.mrb[8].mxu1 %v1002_v47  ;;  %495 = vmatprep.mubr.bf16.mxu0 %v1004_v48 }
  0x35   :  { %560 = vmatprep.mubr.bf16.mxu1 %v1006_v49 }
  0x3b   :  { %496 = vmatmul.mubr.bf16.gmra.mrb[12].mxu0 %v1008_v50 }
  0x3c   :  { %561 = vmatmul.mubr.bf16.gmra.mrb[12].mxu1 %v1009_v51  ;;  %935 = vmatprep.mubr.msk.bf16.mxu0 %vm426_vm0, %v1011_v52 }
  0x3d   :  { %939 = vmatprep.mubr.msk.bf16.mxu1 %vm426_vm0, %v1012_v53 }
  0x43   :  { %936 = vmatmul.mubr.msk.bf16.vlgmr.msra.gmra.mrb[16].mxu0 %vm426_vm0, %v1013_v54 }
  0x44   :  { %940 = vmatmul.mubr.msk.bf16.vlgmr.msra.gmra.mrb[16].mxu1 %vm426_vm0, %v1014_v55 }
  0xf6   :  { %v855_v56 = vpop.f32.mrb[0].mxu0 }
  0xf7   :  { %v895_v57 = vpop.f32.mrb[0].mxu1  ;;  %v856_v58 = vpop.f32.mrb[1].mxu0 }
  0xf8   :  { %v857_v59 = vadd.f32 %v856_v58, %v855_v56  ;;  %v896_v60 = vpop.f32.mrb[1].mxu1  ;;  %v858_v61 = vpop.f32.mrb[2].mxu0 }
  0xf9   :  { %v897_v62 = vadd.f32 %v896_v60, %v895_v57  ;;  %v898_v63 = vpop.f32.mrb[2].mxu1  ;;  %v859_v0 = vpop.f32.mrb[3].mxu0 }
  0xfa   :  { %v860_v1 = vadd.f32 %v859_v0, %v858_v61  ;;  %v899_v2 = vpop.f32.mrb[3].mxu1 }
  0xfb   :  { %v900_v3 = vadd.f32 %v899_v2, %v898_v63  ;;  %v539_v4 = vadd.f32 %v897_v62, %v857_v59 }
  0xfd   :  { %v542_v5 = vadd.f32 %v900_v3, %v860_v1 }
  0xfe   :  { %v861_v6 = vpop.f32.mrb[4].mxu0 }
  0xff   :  { %v901_v7 = vpop.f32.mrb[4].mxu1  ;;  %v862_v8 = vpop.f32.mrb[5].mxu0 }
 0x100   :  { %v863_v9 = vadd.f32 %v862_v8, %v861_v6  ;;  %v902_v10 = vpop.f32.mrb[5].mxu1  ;;  %v864_v11 = vpop.f32.mrb[6].mxu0 }
 0x101   :  { %v903_v12 = vadd.f32 %v902_v10, %v901_v7  ;;  %v904_v13 = vpop.f32.mrb[6].mxu1  ;;  %v865_v14 = vpop.f32.mrb[7].mxu0 }
 0x102   :  { %v866_v15 = vadd.f32 %v865_v14, %v864_v11  ;;  %v905_v16 = vpop.f32.mrb[7].mxu1 }
 0x103   :  { %v906_v17 = vadd.f32 %v905_v16, %v904_v13  ;;  %v547_v18 = vadd.f32 %v903_v12, %v863_v9 }
 0x105   :  { %v550_v19 = vadd.f32 %v906_v17, %v866_v15 }
 0x106   :  { %v867_v20 = vpop.f32.mrb[8].mxu0 }
 0x107   :  { %v907_v21 = vpop.f32.mrb[8].mxu1  ;;  %v868_v22 = vpop.f32.mrb[9].mxu0 }
 0x108   :  { %v869_v23 = vadd.f32 %v868_v22, %v867_v20  ;;  %v908_v24 = vpop.f32.mrb[9].mxu1  ;;  %v870_v25 = vpop.f32.mrb[10].mxu0 }
 0x109   :  { %v909_v26 = vadd.f32 %v908_v24, %v907_v21  ;;  %v910_v27 = vpop.f32.mrb[10].mxu1  ;;  %v871_v28 = vpop.f32.mrb[11].mxu0 }
 0x10a   :  { %v872_v29 = vadd.f32 %v871_v28, %v870_v25  ;;  %v911_v30 = vpop.f32.mrb[11].mxu1 }
 0x10b   :  { %v912_v31 = vadd.f32 %v911_v30, %v910_v27  ;;  %v555_v32 = vadd.f32 %v909_v26, %v869_v23 }
 0x10d   :  { %v558_v33 = vadd.f32 %v912_v31, %v872_v29 }
 0x10e   :  { %v873_v34 = vpop.f32.mrb[12].mxu0 }
 0x10f   :  { %v913_v35 = vpop.f32.mrb[12].mxu1  ;;  %v874_v36 = vpop.f32.mrb[13].mxu0 }
 0x110   :  { %v875_v37 = vadd.f32 %v874_v36, %v873_v34  ;;  %v914_v38 = vpop.f32.mrb[13].mxu1  ;;  %v876_v39 = vpop.f32.mrb[14].mxu0 }
 0x111   :  { %v915_v40 = vadd.f32 %v914_v38, %v913_v35  ;;  %v916_v41 = vpop.f32.mrb[14].mxu1  ;;  %v877_v42 = vpop.f32.mrb[15].mxu0 }
 0x112   :  { %v878_v43 = vadd.f32 %v877_v42, %v876_v39  ;;  %v917_v44 = vpop.f32.mrb[15].mxu1 }
 0x113   :  { %v918_v45 = vadd.f32 %v917_v44, %v916_v41  ;;  %v563_v46 = vadd.f32 %v915_v40, %v875_v37 }
 0x115   :  { %v566_v47 = vadd.f32 %v918_v45, %v878_v43 }
 0x116   :  { %v937_v48 = vpop.f32.mrb[16].mxu0 }
 0x117   :  { %v612_v49 = vadd.f32 %v937_v48, %v547_v18  ;;  %v941_v50 = vpop.f32.mrb[16].mxu1  ;;  %v603_v51 = vpop.f32.mrb[17].mxu0 }
 0x118   :  { %v628_v52 = vadd.f32 %v941_v50, %v563_v46  ;;  %v604_v53 = vadd.f32 %v603_v51, %v539_v4  ;;  %v619_v54 = vpop.f32.mrb[17].mxu1  ;;  %v938_v55 = vpop.f32.mrb[18].mxu0 }
 0x119   :  { %v620_v56 = vadd.f32 %v619_v54, %v555_v32  ;;  %v615_v57 = vadd.f32 %v938_v55, %v550_v19  ;;  %v942_v58 = vpop.f32.mrb[18].mxu1  ;;  %v606_v59 = vpop.f32.mrb[19].mxu0  ;;  %678 = vadd.xlane.f32.xlu1 %v612_v49  ;;  %v701_v4 = vmul.f32 %v612_v49, %v612_v49 }
 0x11a   :  { %v631_v60 = vadd.f32 %v942_v58, %v566_v47  ;;  %v607_v61 = vadd.f32 %v606_v59, %v542_v5  ;;  %v622_v62 = vpop.f32.mrb[19].mxu1  ;;  %686 = vadd.xlane.f32.xlu0 %v628_v52  ;;  %v699_v7 = vmul.f32 %v604_v53, %v604_v53  ;;  %v705_v11 = vmul.f32 %v628_v52, %v628_v52 }
 0x11b   :  { %v824_v63 = vpack.c.bf16 %v615_v57, %v612_v49  ;;  %v623_v0 = vadd.f32 %v622_v62, %v558_v33  ;;  %v702_v5 = vmul.f32 %v615_v57, %v615_v57  ;;  %v703_v9 = vmul.f32 %v620_v56, %v620_v56 }
 0x11c   :  { %v834_v1 = vpack.c.bf16 %v631_v60, %v628_v52  ;;  %v819_v2 = vpack.c.bf16 %v607_v61, %v604_v53  ;;  %v700_v6 = vmul.f32 %v607_v61, %v607_v61  ;;  %v706_v10 = vmul.f32 %v631_v60, %v631_v60 }
 0x11d   :  { %836 = vst [vmem:[%s1281_s2 + $0x8] sm:$0xff] %v824_v63   ;;  %v829_v3 = vpack.c.bf16 %v623_v0, %v620_v56  ;;  %680 = vadd.xlane.f32.xlu1 %v615_v57  ;;  %v704_v8 = vmul.f32 %v623_v0, %v623_v0 }
 0x11e   :  { %838 = vst [vmem:[%s1281_s2 + $0x18] sm:$0xff] %v834_v1   ;;  %820 = vst [vmem:[%s1281_s2] sm:$0xff] %v819_v2   ;;  %674 = vadd.xlane.f32.xlu0 %v604_v53 }
 0x11f   :  { %837 = vst [vmem:[%s1281_s2 + $0x10] sm:$0xff] %v829_v3  }
 0x121   :  { %688 = vadd.xlane.f32.xlu1 %v631_v60 }
 0x122   :  { %682 = vadd.xlane.f32.xlu0 %v620_v56 }
 0x125   :  { %684 = vadd.xlane.f32.xlu1 %v623_v0 }
 0x126   :  { %711 = vadd.xlane.f32.xlu0 %v701_v4 }
 0x129   :  { %713 = vadd.xlane.f32.xlu1 %v702_v5 }
 0x12a   :  { %676 = vadd.xlane.f32.xlu0 %v607_v61 }
 0x12d   :  { %709 = vadd.xlane.f32.xlu1 %v700_v6 }
 0x12e   :  { %707 = vadd.xlane.f32.xlu0 %v699_v7 }
 0x131   :  { %717 = vadd.xlane.f32.xlu1 %v704_v8 }
 0x132   :  { %715 = vadd.xlane.f32.xlu0 %v703_v9 }
 0x135   :  { %721 = vadd.xlane.f32.xlu1 %v706_v10 }
 0x136   :  { %719 = vadd.xlane.f32.xlu0 %v705_v11 }
 0x1a6   :  { %v679_v12 = vpop.xlane.xlu1 %678 }
 0x1a7   :  { %v687_v13 = vpop.xlane.xlu0 %686  ;;  %693 = vst.msk [vmem:[%s1282_s3 + $0x10] sm:$0xff] %vm690_vm1, %v679_v12 }
 0x1a8   :  { %697 = vst.msk [vmem:[%s1282_s3 + $0x30] sm:$0xff] %vm690_vm1, %v687_v13 }
 0x1aa   :  { %v681_v14 = vpop.xlane.xlu1 %680 }
 0x1ab   :  { %694 = vst.msk [vmem:[%s1282_s3 + $0x18] sm:$0xff] %vm690_vm1, %v681_v14  ;;  %v675_v15 = vpop.xlane.xlu0 %674 }
 0x1ac   :  { %691 = vst.msk [vmem:[%s1282_s3] sm:$0xff] %vm690_vm1, %v675_v15 }
 0x1ae   :  { %v689_v16 = vpop.xlane.xlu1 %688 }
 0x1af   :  { %698 = vst.msk [vmem:[%s1282_s3 + $0x38] sm:$0xff] %vm690_vm1, %v689_v16  ;;  %v683_v17 = vpop.xlane.xlu0 %682 }
 0x1b0   :  { %695 = vst.msk [vmem:[%s1282_s3 + $0x20] sm:$0xff] %vm690_vm1, %v683_v17 }
 0x1b2   :  { %v685_v18 = vpop.xlane.xlu1 %684 }
 0x1b3   :  { %696 = vst.msk [vmem:[%s1282_s3 + $0x28] sm:$0xff] %vm690_vm1, %v685_v18  ;;  %v712_v19 = vpop.xlane.xlu0 %711 }
 0x1b4   :  { %726 = vst.msk [vmem:[%s1282_s3 + $0x10] sm:$0xff] %vm723_vm2, %v712_v19 }
 0x1b6   :  { %v714_v20 = vpop.xlane.xlu1 %713 }
 0x1b7   :  { %727 = vst.msk [vmem:[%s1282_s3 + $0x18] sm:$0xff] %vm723_vm2, %v714_v20  ;;  %v677_v21 = vpop.xlane.xlu0 %676 }
 0x1b8   :  { %692 = vst.msk [vmem:[%s1282_s3 + $0x8] sm:$0xff] %vm690_vm1, %v677_v21 }
 0x1ba   :  { %v710_v22 = vpop.xlane.xlu1 %709 }
 0x1bb   :  { %725 = vst.msk [vmem:[%s1282_s3 + $0x8] sm:$0xff] %vm723_vm2, %v710_v22  ;;  %v708_v23 = vpop.xlane.xlu0 %707 }
 0x1bc   :  { %724 = vst.msk [vmem:[%s1282_s3] sm:$0xff] %vm723_vm2, %v708_v23 }
 0x1be   :  { %v718_v24 = vpop.xlane.xlu1 %717 }
 0x1bf   :  { %729 = vst.msk [vmem:[%s1282_s3 + $0x28] sm:$0xff] %vm723_vm2, %v718_v24  ;;  %v716_v25 = vpop.xlane.xlu0 %715 }
 0x1c0   :  { %728 = vst.msk [vmem:[%s1282_s3 + $0x20] sm:$0xff] %vm723_vm2, %v716_v25 }
 0x1c2   :  { %v722_v26 = vpop.xlane.xlu1 %721 }
 0x1c3   :  { %731 = vst.msk [vmem:[%s1282_s3 + $0x38] sm:$0xff] %vm723_vm2, %v722_v26  ;;  %v720_v27 = vpop.xlane.xlu0 %719 }
 0x1c4   :  { %730 = vst.msk [vmem:[%s1282_s3 + $0x30] sm:$0xff] %vm723_vm2, %v720_v27 }

// kernel: forward.39
= control target key start
LH: loop header
LB: loop body
LE: loop exit
PB: predicated region body
PF: predicated region fallthrough
CT: control target
= control target key end

     0   :  { %vm139_vm0 = vcmask 123904   ;;  %vm792_vm1 = vcmask 523264   ;;  %vm721_vm2 = vcmask 1041409   ;;  %vm723_vm3 = vcmask 1042434   ;;  %s1488_s0 = inlined_call_operand.vmem [shape: bf16[64,2,16], index: 0, kind: input, shape index: {}]   ;;  %s1489_s1 = inlined_call_operand.vmem [shape: f32[10,64], index: 1, kind: input, shape index: {}]   ;;  %s1490_s2 = inlined_call_operand.vmem [shape: f32[10,2], index: 2, kind: output, shape index: {}]  }
   0x1   :  { %v19_v0 = vld [vmem:[%s1488_s0 + $0x8] sm:$0x1]  ;;  %v11_v1 = vld [vmem:[%s1488_s0] sm:$0x1]  ;;  %v20_v2 = vld [vmem:[%s1488_s0 + $0x9] sm:$0x1] }
   0x2   :  { %v83_v3 = vunpack.c.l.bf16 %v19_v0  ;;  %v75_v4 = vunpack.c.l.bf16 %v11_v1  ;;  %v84_v5 = vunpack.c.l.bf16 %v20_v2  ;;  %v12_v6 = vld [vmem:[%s1488_s0 + $0x1] sm:$0x1]  ;;  %v21_v8 = vld [vmem:[%s1488_s0 + $0xa] sm:$0x1]  ;;  %v13_v9 = vld [vmem:[%s1488_s0 + $0x2] sm:$0x1] }
   0x3   :  { %v76_v7 = vunpack.c.l.bf16 %v12_v6  ;;  %v85_v14 = vunpack.c.l.bf16 %v21_v8  ;;  %v77_v15 = vunpack.c.l.bf16 %v13_v9  ;;  %v22_v16 = vld [vmem:[%s1488_s0 + $0xb] sm:$0x1]  ;;  %v14_v17 = vld [vmem:[%s1488_s0 + $0x3] sm:$0x1]  ;;  %v23_v18 = vld [vmem:[%s1488_s0 + $0xc] sm:$0x1] }
   0x4   :  { %v164_v10 = vsel %vm139_vm0, %v83_v3, 0.0  ;;  %v140_v11 = vsel %vm139_vm0, %v75_v4, 0.0  ;;  %v167_v12 = vsel %vm139_vm0, %v84_v5, 0.0  ;;  %v15_v19 = vld [vmem:[%s1488_s0 + $0x4] sm:$0x1]  ;;  %v86_v24 = vunpack.c.l.bf16 %v22_v16 }
   0x5   :  { %165 = vadd.xlane.f32.xlu1 %v164_v10  ;;  %141 = vadd.xlane.f32.xlu0 %v140_v11  ;;  %v143_v13 = vsel %vm139_vm0, %v76_v7, 0.0  ;;  %v24_v20 = vld [vmem:[%s1488_s0 + $0xd] sm:$0x1]  ;;  %v16_v21 = vld [vmem:[%s1488_s0 + $0x5] sm:$0x1]  ;;  %v170_v22 = vsel %vm139_vm0, %v85_v14, 0.0  ;;  %v78_v25 = vunpack.c.l.bf16 %v14_v17  ;;  %v87_v28 = vunpack.c.l.bf16 %v23_v18 }
   0x6   :  { %v146_v23 = vsel %vm139_vm0, %v77_v15, 0.0  ;;  %v28_v26 = vld [vmem:[%s1488_s0 + $0x11] sm:$0x1]  ;;  %v27_v27 = vld [vmem:[%s1488_s0 + $0x10] sm:$0x1]  ;;  %v79_v29 = vunpack.c.l.bf16 %v15_v19  ;;  %v88_v32 = vunpack.c.l.bf16 %v24_v20  ;;  %v80_v33 = vunpack.c.l.bf16 %v16_v21 }
   0x7   :  { %v36_v30 = vld [vmem:[%s1488_s0 + $0x19] sm:$0x1]  ;;  %v35_v31 = vld [vmem:[%s1488_s0 + $0x18] sm:$0x1]  ;;  %v92_v34 = vunpack.c.l.bf16 %v28_v26  ;;  %v91_v35 = vunpack.c.l.bf16 %v27_v27  ;;  %v173_v36 = vsel %vm139_vm0, %v86_v24, 0.0  ;;  %v149_v37 = vsel %vm139_vm0, %v78_v25, 0.0 }
   0x8   :  { %v100_v38 = vunpack.c.l.bf16 %v36_v30  ;;  %v99_v39 = vunpack.c.l.bf16 %v35_v31  ;;  %v1003_v40 = vld [vmem:[%s1488_s0 + $0xe] sm:$0x1]  ;;  %v1008_v41 = vld [vmem:[%s1488_s0 + $0x6] sm:$0x1]  ;;  %v176_v42 = vsel %vm139_vm0, %v87_v28, 0.0  ;;  %v152_v43 = vsel %vm139_vm0, %v79_v29, 0.0 }
   0x9   :  { %168 = vadd.xlane.f32.xlu1 %v167_v12  ;;  %144 = vadd.xlane.f32.xlu0 %v143_v13  ;;  %v179_v44 = vsel %vm139_vm0, %v88_v32, 0.0  ;;  %v155_v45 = vsel %vm139_vm0, %v80_v33, 0.0  ;;  %v1017_v46 = vld [vmem:[%s1488_s0 + $0x1a] sm:$0x1]  ;;  %v1022_v47 = vld [vmem:[%s1488_s0 + $0x12] sm:$0x1]  ;;  %v89_v50 = vunpack.c.l.bf16 %v1003_v40  ;;  %v81_v51 = vunpack.c.l.bf16 %v1008_v41 }
   0xa   :  { %v1025_v48 = vsel %vm139_vm0, %v92_v34, 0.0  ;;  %v1028_v49 = vsel %vm139_vm0, %v91_v35, 0.0  ;;  %v41_v52 = vld [vmem:[%s1488_s0 + $0x1e] sm:$0x1]  ;;  %v33_v53 = vld [vmem:[%s1488_s0 + $0x16] sm:$0x1]  ;;  %v101_v60 = vunpack.c.l.bf16 %v1017_v46  ;;  %v93_v61 = vunpack.c.l.bf16 %v1022_v47 }
   0xb   :  { %v1039_v54 = vsel %vm139_vm0, %v100_v38, 0.0  ;;  %v1042_v55 = vsel %vm139_vm0, %v99_v39, 0.0  ;;  %v105_v56 = vunpack.c.l.bf16 %v41_v52  ;;  %v97_v57 = vunpack.c.l.bf16 %v33_v53  ;;  %v53_v58 = vld [vmem:[%s1488_s0 + $0x2a] sm:$0x1]  ;;  %v45_v59 = vld [vmem:[%s1488_s0 + $0x22] sm:$0x1] }
   0xc   :  { %v117_v62 = vunpack.c.l.bf16 %v53_v58  ;;  %v109_v63 = vunpack.c.l.bf16 %v45_v59  ;;  %v42_v0 = vld [vmem:[%s1488_s0 + $0x1f] sm:$0x1]  ;;  %v34_v1 = vld [vmem:[%s1488_s0 + $0x17] sm:$0x1]  ;;  %v54_v6 = vld [vmem:[%s1488_s0 + $0x2b] sm:$0x1] }
   0xd   :  { %171 = vadd.xlane.f32.xlu1 %v170_v22  ;;  %147 = vadd.xlane.f32.xlu0 %v146_v23  ;;  %v1059_v2 = vsel %vm139_vm0, %v105_v56, 0.0  ;;  %v1062_v3 = vsel %vm139_vm0, %v97_v57, 0.0  ;;  %v106_v4 = vunpack.c.l.bf16 %v42_v0  ;;  %v98_v5 = vunpack.c.l.bf16 %v34_v1  ;;  %v46_v7 = vld [vmem:[%s1488_s0 + $0x23] sm:$0x1]  ;;  %v55_v12 = vld [vmem:[%s1488_s0 + $0x2c] sm:$0x1] }
   0xe   :  { %v1071_v8 = vsel %vm139_vm0, %v117_v62, 0.0  ;;  %v1074_v9 = vsel %vm139_vm0, %v109_v63, 0.0  ;;  %v118_v10 = vunpack.c.l.bf16 %v54_v6  ;;  %v110_v11 = vunpack.c.l.bf16 %v46_v7  ;;  %v47_v13 = vld [vmem:[%s1488_s0 + $0x24] sm:$0x1]  ;;  %v56_v18 = vld [vmem:[%s1488_s0 + $0x2d] sm:$0x1] }
   0xf   :  { %v1083_v14 = vsel %vm139_vm0, %v106_v4, 0.0  ;;  %v1086_v15 = vsel %vm139_vm0, %v98_v5, 0.0  ;;  %v119_v16 = vunpack.c.l.bf16 %v55_v12  ;;  %v111_v17 = vunpack.c.l.bf16 %v47_v13  ;;  %v48_v19 = vld [vmem:[%s1488_s0 + $0x25] sm:$0x1]  ;;  %v60_v24 = vld [vmem:[%s1488_s0 + $0x31] sm:$0x1] }
  0x10   :  { %v1095_v20 = vsel %vm139_vm0, %v118_v10, 0.0  ;;  %v1098_v21 = vsel %vm139_vm0, %v110_v11, 0.0  ;;  %v120_v22 = vunpack.c.l.bf16 %v56_v18  ;;  %v112_v23 = vunpack.c.l.bf16 %v48_v19  ;;  %v59_v25 = vld [vmem:[%s1488_s0 + $0x30] sm:$0x1]  ;;  %v68_v30 = vld [vmem:[%s1488_s0 + $0x39] sm:$0x1] }
  0x11   :  { %174 = vadd.xlane.f32.xlu1 %v173_v36  ;;  %150 = vadd.xlane.f32.xlu0 %v149_v37  ;;  %v1107_v26 = vsel %vm139_vm0, %v119_v16, 0.0  ;;  %v1110_v27 = vsel %vm139_vm0, %v111_v17, 0.0  ;;  %v124_v28 = vunpack.c.l.bf16 %v60_v24  ;;  %v123_v29 = vunpack.c.l.bf16 %v59_v25  ;;  %v67_v31 = vld [vmem:[%s1488_s0 + $0x38] sm:$0x1]  ;;  %v57_v36 = vld [vmem:[%s1488_s0 + $0x2e] sm:$0x1] }
  0x12   :  { %v1119_v32 = vsel %vm139_vm0, %v120_v22, 0.0  ;;  %v1122_v33 = vsel %vm139_vm0, %v112_v23, 0.0  ;;  %v132_v34 = vunpack.c.l.bf16 %v68_v30  ;;  %v131_v35 = vunpack.c.l.bf16 %v67_v31  ;;  %v49_v37 = vld [vmem:[%s1488_s0 + $0x26] sm:$0x1]  ;;  %v58_v58 = vld [vmem:[%s1488_s0 + $0x2f] sm:$0x1] }
  0x13   :  { %v1131_v38 = vsel %vm139_vm0, %v124_v28, 0.0  ;;  %v1134_v39 = vsel %vm139_vm0, %v123_v29, 0.0  ;;  %v50_v59 = vld [vmem:[%s1488_s0 + $0x27] sm:$0x1]  ;;  %v122_v0 = vunpack.c.l.bf16 %v58_v58  ;;  %v70_v4 = vld [vmem:[%s1488_s0 + $0x3b] sm:$0x1] }
  0x14   :  { %v1143_v52 = vsel %vm139_vm0, %v132_v34, 0.0  ;;  %v1146_v53 = vsel %vm139_vm0, %v131_v35, 0.0  ;;  %v114_v1 = vunpack.c.l.bf16 %v50_v59  ;;  %v62_v5 = vld [vmem:[%s1488_s0 + $0x33] sm:$0x1]  ;;  %v134_v10 = vunpack.c.l.bf16 %v70_v4  ;;  %v71_v12 = vld [vmem:[%s1488_s0 + $0x3c] sm:$0x1] }
  0x15   :  { %177 = vadd.xlane.f32.xlu1 %v176_v42  ;;  %153 = vadd.xlane.f32.xlu0 %v152_v43  ;;  %v121_v42 = vunpack.c.l.bf16 %v57_v36  ;;  %v113_v43 = vunpack.c.l.bf16 %v49_v37  ;;  %v126_v11 = vunpack.c.l.bf16 %v62_v5  ;;  %v63_v13 = vld [vmem:[%s1488_s0 + $0x34] sm:$0x1]  ;;  %v135_v16 = vunpack.c.l.bf16 %v71_v12  ;;  %v72_v18 = vld [vmem:[%s1488_s0 + $0x3d] sm:$0x1]  ;;  %v64_v19 = vld [vmem:[%s1488_s0 + $0x35] sm:$0x1] }
  0x16   :  { %v127_v17 = vunpack.c.l.bf16 %v63_v13  ;;  %v1193_v22 = vsel %vm139_vm0, %v134_v10, 0.0  ;;  %v136_v24 = vunpack.c.l.bf16 %v72_v18  ;;  %v128_v25 = vunpack.c.l.bf16 %v64_v19  ;;  %v73_v28 = vld [vmem:[%s1488_s0 + $0x3e] sm:$0x1]  ;;  %v65_v29 = vld [vmem:[%s1488_s0 + $0x36] sm:$0x1] }
  0x17   :  { %v1155_v62 = vsel %vm139_vm0, %v121_v42, 0.0  ;;  %v1158_v63 = vsel %vm139_vm0, %v113_v43, 0.0  ;;  %v1196_v23 = vsel %vm139_vm0, %v126_v11, 0.0  ;;  %v1205_v30 = vsel %vm139_vm0, %v135_v16, 0.0  ;;  %v74_v36 = vld [vmem:[%s1488_s0 + $0x3f] sm:$0x1] }
  0x18   :  { %v1208_v31 = vsel %vm139_vm0, %v127_v17, 0.0  ;;  %v137_v34 = vunpack.c.l.bf16 %v73_v28  ;;  %v129_v35 = vunpack.c.l.bf16 %v65_v29  ;;  %v66_v37 = vld [vmem:[%s1488_s0 + $0x37] sm:$0x1]  ;;  %v1219_v42 = vsel %vm139_vm0, %v136_v24, 0.0  ;;  %v26_v58 = vld [vmem:[%s1488_s0 + $0xf] sm:$0x1] }
  0x19   :  { %180 = vadd.xlane.f32.xlu1 %v179_v44  ;;  %156 = vadd.xlane.f32.xlu0 %v155_v45  ;;  %v69_v44 = vld [vmem:[%s1488_s0 + $0x3a] sm:$0x1]  ;;  %v61_v45 = vld [vmem:[%s1488_s0 + $0x32] sm:$0x1]  ;;  %v1222_v43 = vsel %vm139_vm0, %v128_v25, 0.0  ;;  %v194_v59 = vsel %vm139_vm0, %v93_v61, 0.0 }
  0x1a   :  { %v133_v56 = vunpack.c.l.bf16 %v69_v44  ;;  %v125_v57 = vunpack.c.l.bf16 %v61_v45  ;;  %v138_v44 = vunpack.c.l.bf16 %v74_v36  ;;  %v130_v45 = vunpack.c.l.bf16 %v66_v37  ;;  %v18_v40 = vld [vmem:[%s1488_s0 + $0x7] sm:$0x1]  ;;  %v38_v4 = vld [vmem:[%s1488_s0 + $0x1b] sm:$0x1]  ;;  %v30_v5 = vld [vmem:[%s1488_s0 + $0x13] sm:$0x1] }
  0x1b   :  { %v102_v10 = vunpack.c.l.bf16 %v38_v4  ;;  %v94_v47 = vunpack.c.l.bf16 %v30_v5  ;;  %v39_v61 = vld [vmem:[%s1488_s0 + $0x1c] sm:$0x1]  ;;  %v31_v11 = vld [vmem:[%s1488_s0 + $0x14] sm:$0x1]  ;;  %v40_v18 = vld [vmem:[%s1488_s0 + $0x1d] sm:$0x1] }
  0x1c   :  { %v1169_v6 = vsel %vm139_vm0, %v133_v56, 0.0  ;;  %v1172_v7 = vsel %vm139_vm0, %v125_v57, 0.0  ;;  %v182_v56 = vsel %vm139_vm0, %v89_v50, 0.0  ;;  %v158_v57 = vsel %vm139_vm0, %v81_v51, 0.0  ;;  %v32_v19 = vld [vmem:[%s1488_s0 + $0x15] sm:$0x1] }
  0x1d   :  { %192 = vadd.xlane.f32.xlu1 %v1025_v48  ;;  %189 = vadd.xlane.f32.xlu0 %v1028_v49  ;;  %v1181_v48 = vsel %vm139_vm0, %v122_v0, 0.0  ;;  %v1184_v49 = vsel %vm139_vm0, %v114_v1, 0.0  ;;  %v1243_v50 = vsel %vm139_vm0, %v138_v44, 0.0  ;;  %v1246_v41 = vsel %vm139_vm0, %v130_v45, 0.0 }
  0x1e   :  { %v218_v51 = vsel %vm139_vm0, %v101_v60, 0.0  ;;  %v90_v0 = vunpack.c.l.bf16 %v26_v58  ;;  %v82_v1 = vunpack.c.l.bf16 %v18_v40  ;;  %v221_v12 = vsel %vm139_vm0, %v102_v10, 0.0 }
  0x1f   :  { %v197_v13 = vsel %vm139_vm0, %v94_v47, 0.0  ;;  %v103_v16 = vunpack.c.l.bf16 %v39_v61  ;;  %v95_v17 = vunpack.c.l.bf16 %v31_v11  ;;  %v104_v28 = vunpack.c.l.bf16 %v40_v18 }
  0x20   :  { %v185_v46 = vsel %vm139_vm0, %v90_v0, 0.0  ;;  %v161_v60 = vsel %vm139_vm0, %v82_v1, 0.0  ;;  %v96_v29 = vunpack.c.l.bf16 %v32_v19  ;;  %vm725_vm4 = vcmask 1043459  }
  0x21   :  { %216 = vadd.xlane.f32.xlu1 %v1039_v54  ;;  %213 = vadd.xlane.f32.xlu0 %v1042_v55  ;;  %v1231_v54 = vsel %vm139_vm0, %v137_v34, 0.0  ;;  %v1234_v55 = vsel %vm139_vm0, %v129_v35, 0.0  ;;  %v224_v24 = vsel %vm139_vm0, %v103_v16, 0.0  ;;  %v200_v25 = vsel %vm139_vm0, %v95_v17, 0.0  ;;  %v44_v34 = vld [vmem:[%s1488_s0 + $0x21] sm:$0x1] }
  0x22   :  { %v43_v35 = vld [vmem:[%s1488_s0 + $0x20] sm:$0x1]  ;;  %v227_v36 = vsel %vm139_vm0, %v104_v28, 0.0  ;;  %v203_v37 = vsel %vm139_vm0, %v96_v29, 0.0  ;;  %v108_v44 = vunpack.c.l.bf16 %v44_v34  ;;  %vm727_vm5 = vcmask 1044484  }
  0x23   :  { %v107_v45 = vunpack.c.l.bf16 %v43_v35  ;;  %vm729_vm6 = vcmask 1045509   ;;  %vm731_vm7 = vcmask 1046534   ;;  %vm733_vm8 = vcmask 1047559  }
  0x24   :  { %v239_v58 = vsel %vm139_vm0, %v108_v44, 0.0  ;;  %vm876_vm9 = vcmask 9216   ;;  %vm874_vm10 = vcmask 15360  }
  0x25   :  { %183 = vadd.xlane.f32.xlu1 %v182_v56  ;;  %159 = vadd.xlane.f32.xlu0 %v158_v57  ;;  %v52_v56 = vld [vmem:[%s1488_s0 + $0x29] sm:$0x1]  ;;  %v51_v57 = vld [vmem:[%s1488_s0 + $0x28] sm:$0x1]  ;;  %v236_v40 = vsel %vm139_vm0, %v107_v45, 0.0 }
  0x29   :  { %219 = vadd.xlane.f32.xlu1 %v218_v51  ;;  %195 = vadd.xlane.f32.xlu0 %v194_v59  ;;  %v116_v51 = vunpack.c.l.bf16 %v52_v56  ;;  %v115_v59 = vunpack.c.l.bf16 %v51_v57 }
  0x2b   :  { %v263_v0 = vsel %vm139_vm0, %v116_v51, 0.0  ;;  %v260_v1 = vsel %vm139_vm0, %v115_v59, 0.0 }
  0x2d   :  { %186 = vadd.xlane.f32.xlu1 %v185_v46  ;;  %162 = vadd.xlane.f32.xlu0 %v161_v60 }
  0x31   :  { %222 = vadd.xlane.f32.xlu1 %v221_v12  ;;  %198 = vadd.xlane.f32.xlu0 %v197_v13 }
  0x35   :  { %225 = vadd.xlane.f32.xlu1 %v224_v24  ;;  %201 = vadd.xlane.f32.xlu0 %v200_v25 }
  0x39   :  { %228 = vadd.xlane.f32.xlu1 %v227_v36  ;;  %204 = vadd.xlane.f32.xlu0 %v203_v37 }
  0x3d   :  { %240 = vadd.xlane.f32.xlu1 %v239_v58  ;;  %237 = vadd.xlane.f32.xlu0 %v236_v40 }
  0x41   :  { %264 = vadd.xlane.f32.xlu1 %v263_v0  ;;  %261 = vadd.xlane.f32.xlu0 %v260_v1 }
  0x45   :  { %231 = vadd.xlane.f32.xlu1 %v1059_v2  ;;  %207 = vadd.xlane.f32.xlu0 %v1062_v3 }
  0x49   :  { %267 = vadd.xlane.f32.xlu1 %v1071_v8  ;;  %243 = vadd.xlane.f32.xlu0 %v1074_v9 }
  0x4d   :  { %234 = vadd.xlane.f32.xlu1 %v1083_v14  ;;  %210 = vadd.xlane.f32.xlu0 %v1086_v15  ;;  %v397_v14 = vld [vmem:[%s1489_s1] sm:$0xff] }
  0x4e   :  { %910 = vmatprep.mubr.msk.f32.mxu0 %vm792_vm1, %v397_v14 }
  0x51   :  { %270 = vadd.xlane.f32.xlu1 %v1095_v20  ;;  %246 = vadd.xlane.f32.xlu0 %v1098_v21 }
  0x55   :  { %273 = vadd.xlane.f32.xlu1 %v1107_v26  ;;  %249 = vadd.xlane.f32.xlu0 %v1110_v27 }
  0x59   :  { %276 = vadd.xlane.f32.xlu1 %v1119_v32  ;;  %252 = vadd.xlane.f32.xlu0 %v1122_v33 }
  0x5d   :  { %288 = vadd.xlane.f32.xlu1 %v1131_v38  ;;  %285 = vadd.xlane.f32.xlu0 %v1134_v39  ;;  %v463_v39 = vlaneseq }
  0x61   :  { %312 = vadd.xlane.f32.xlu1 %v1143_v52  ;;  %309 = vadd.xlane.f32.xlu0 %v1146_v53 }
  0x65   :  { %279 = vadd.xlane.f32.xlu1 %v1155_v62  ;;  %255 = vadd.xlane.f32.xlu0 %v1158_v63  ;;  %v464_v62 = vand.u32 127, %v463_v39  ;;  %v466_v63 = vshrl.u32 %v463_v39, 7 }
  0x69   :  { %315 = vadd.xlane.f32.xlu1 %v1169_v6  ;;  %291 = vadd.xlane.f32.xlu0 %v1172_v7 }
  0x6d   :  { %282 = vadd.xlane.f32.xlu1 %v1181_v48  ;;  %258 = vadd.xlane.f32.xlu0 %v1184_v49  ;;  %v1340_v48 = vsub.s32 %v464_v62, %v466_v63 }
  0x71   :  { %318 = vadd.xlane.f32.xlu1 %v1193_v22  ;;  %294 = vadd.xlane.f32.xlu0 %v1196_v23 }
  0x75   :  { %321 = vadd.xlane.f32.xlu1 %v1205_v30  ;;  %297 = vadd.xlane.f32.xlu0 %v1208_v31 }
  0x79   :  { %324 = vadd.xlane.f32.xlu1 %v1219_v42  ;;  %300 = vadd.xlane.f32.xlu0 %v1222_v43 }
  0x7d   :  { %327 = vadd.xlane.f32.xlu1 %v1231_v54  ;;  %303 = vadd.xlane.f32.xlu0 %v1234_v55 }
  0x81   :  { %330 = vadd.xlane.f32.xlu1 %v1243_v50  ;;  %306 = vadd.xlane.f32.xlu0 %v1246_v41 }
  0x92   :  { %v166_v2 = vpop.xlane.xlu1 %165  ;;  %v142_v3 = vpop.xlane.xlu0 %141 }
  0x93   :  { %v341_v43 = vmul.f32 0.0625, %v166_v2  ;;  %v333_v54 = vmul.f32 0.0625, %v142_v3 }
  0x95   :  { %v500_v17 = vrot.slane %v341_v43, %v1340_v48  ;;  %v468_v18 = vrot.slane %v333_v54, %v1340_v48 }
  0x96   :  { %v169_v8 = vpop.xlane.xlu1 %168  ;;  %v145_v9 = vpop.xlane.xlu0 %144 }
  0x97   :  { %v342_v49 = vmul.f32 0.0625, %v169_v8  ;;  %v334_v22 = vmul.f32 0.0625, %v145_v9 }
  0x99   :  { %v504_v5 = vrot.slane %v342_v49, %v1340_v48  ;;  %v472_v46 = vrot.slane %v334_v22, %v1340_v48 }
  0x9a   :  { %v172_v15 = vpop.xlane.xlu1 %171  ;;  %v148_v20 = vpop.xlane.xlu0 %147 }
  0x9b   :  { %v343_v23 = vmul.f32 0.0625, %v172_v15  ;;  %v335_v30 = vmul.f32 0.0625, %v148_v20  ;;  %v735_v29 = vsel %vm721_vm2, %v504_v5, %v500_v17  ;;  %v722_v34 = vsel %vm721_vm2, %v472_v46, %v468_v18 }
  0x9d   :  { %v508_v47 = vrot.slane %v343_v23, %v1340_v48  ;;  %v476_v61 = vrot.slane %v335_v30, %v1340_v48 }
  0x9e   :  { %v175_v21 = vpop.xlane.xlu1 %174  ;;  %v151_v26 = vpop.xlane.xlu0 %150 }
  0x9f   :  { %v344_v55 = vmul.f32 0.0625, %v175_v21  ;;  %v336_v50 = vmul.f32 0.0625, %v151_v26  ;;  %v736_v37 = vsel %vm723_vm3, %v508_v47, %v735_v29  ;;  %v724_v44 = vsel %vm723_vm3, %v476_v61, %v722_v34 }
  0xa1   :  { %v512_v19 = vrot.slane %v344_v55, %v1340_v48  ;;  %v480_v24 = vrot.slane %v336_v50, %v1340_v48 }
  0xa2   :  { %v178_v27 = vpop.xlane.xlu1 %177  ;;  %v154_v32 = vpop.xlane.xlu0 %153 }
  0xa3   :  { %v345_v41 = vmul.f32 0.0625, %v178_v27  ;;  %v337_v4 = vmul.f32 0.0625, %v154_v32  ;;  %v737_v40 = vsel %vm725_vm4, %v512_v19, %v736_v37  ;;  %v726_v51 = vsel %vm725_vm4, %v480_v24, %v724_v44 }
  0xa5   :  { %v516_v25 = vrot.slane %v345_v41, %v1340_v48  ;;  %v484_v28 = vrot.slane %v337_v4, %v1340_v48 }
  0xa6   :  { %v181_v33 = vpop.xlane.xlu1 %180  ;;  %v157_v38 = vpop.xlane.xlu0 %156 }
  0xa7   :  { %v346_v60 = vmul.f32 0.0625, %v181_v33  ;;  %v338_v10 = vmul.f32 0.0625, %v157_v38  ;;  %v738_v1 = vsel %vm727_vm5, %v516_v25, %v737_v40  ;;  %v728_v2 = vsel %vm727_vm5, %v484_v28, %v726_v51 }
  0xa9   :  { %v520_v35 = vrot.slane %v346_v60, %v1340_v48  ;;  %v488_v36 = vrot.slane %v338_v10, %v1340_v48 }
  0xaa   :  { %v1332_v52 = vpop.xlane.xlu1 %192  ;;  %v1334_v53 = vpop.xlane.xlu0 %189 }
  0xab   :  { %v730_v9 = vsel %vm729_vm6, %v488_v36, %v728_v2  ;;  %v739_v14 = vsel %vm729_vm6, %v520_v35, %v738_v1 }
  0xae   :  { %v1336_v6 = vpop.xlane.xlu1 %216  ;;  %v1338_v7 = vpop.xlane.xlu0 %213 }
  0xaf   :  { %v358_v43 = vmul.f32 0.0625, %v1336_v6  ;;  %v357_v54 = vmul.f32 0.0625, %v1338_v7 }
  0xb2   :  { %v184_v31 = vpop.xlane.xlu1 %183  ;;  %v160_v42 = vpop.xlane.xlu0 %159 }
  0xb3   :  { %v347_v11 = vmul.f32 0.0625, %v184_v31  ;;  %v339_v12 = vmul.f32 0.0625, %v160_v42  ;;  %v350_v31 = vmul.f32 0.0625, %v1332_v52  ;;  %v349_v42 = vmul.f32 0.0625, %v1334_v53 }
  0xb4   :  { %v568_v52 = vrot.slane %v358_v43, %v1340_v48  ;;  %v564_v53 = vrot.slane %v357_v54, %v1340_v48 }
  0xb5   :  { %v524_v45 = vrot.slane %v347_v11, %v1340_v48  ;;  %v492_v56 = vrot.slane %v339_v12, %v1340_v48  ;;  %v536_v60 = vrot.slane %v350_v31, %v1340_v48  ;;  %v532_v10 = vrot.slane %v349_v42, %v1340_v48 }
  0xb6   :  { %v220_v13 = vpop.xlane.xlu1 %219  ;;  %v196_v16 = vpop.xlane.xlu0 %195  ;;  %v749_v34 = vsel %vm721_vm2, %v568_v52, %v564_v53 }
  0xb7   :  { %v732_v21 = vsel %vm731_vm7, %v492_v56, %v730_v9  ;;  %v740_v26 = vsel %vm731_vm7, %v524_v45, %v739_v14  ;;  %v359_v55 = vmul.f32 0.0625, %v220_v13  ;;  %v351_v50 = vmul.f32 0.0625, %v196_v16 }
  0xb8   :  { %v742_v29 = vsel %vm721_vm2, %v536_v60, %v532_v10 }
  0xb9   :  { %v572_v7 = vrot.slane %v359_v55, %v1340_v48  ;;  %v540_v12 = vrot.slane %v351_v50, %v1340_v48 }
  0xba   :  { %v187_v57 = vpop.xlane.xlu1 %186  ;;  %v163_v58 = vpop.xlane.xlu0 %162 }
  0xbb   :  { %v348_v59 = vmul.f32 0.0625, %v187_v57  ;;  %v340_v0 = vmul.f32 0.0625, %v163_v58  ;;  %v750_v37 = vsel %vm723_vm3, %v572_v7, %v749_v34  ;;  %v743_v44 = vsel %vm723_vm3, %v540_v12, %v742_v29 }
  0xbd   :  { %v528_v3 = vrot.slane %v348_v59, %v1340_v48  ;;  %v496_v8 = vrot.slane %v340_v0, %v1340_v48 }
  0xbe   :  { %v223_v15 = vpop.xlane.xlu1 %222  ;;  %v199_v20 = vpop.xlane.xlu0 %198 }
  0xbf   :  { %v734_v27 = vsel %vm733_vm8, %v496_v8, %v732_v21  ;;  %v741_v32 = vsel %vm733_vm8, %v528_v3, %v740_v26  ;;  %v360_v5 = vmul.f32 0.0625, %v223_v15  ;;  %v352_v46 = vmul.f32 0.0625, %v199_v20 }
  0xc0   :  { %v913_v33 = vpack.c.bf16 %v741_v32, %v734_v27 }
  0xc1   :  { %v576_v19 = vrot.slane %v360_v5, %v1340_v48  ;;  %v544_v24 = vrot.slane %v352_v46, %v1340_v48 }
  0xc2   :  { %v226_v38 = vpop.xlane.xlu1 %225  ;;  %914 = vmatprep.subr.bf16.mxu0 %v913_v33  ;;  %v202_v39 = vpop.xlane.xlu0 %201 }
  0xc3   :  { %916 = vmatpush3.bf16.msra.mxu0 %v913_v33  ;;  %v361_v47 = vmul.f32 0.0625, %v226_v38  ;;  %v353_v61 = vmul.f32 0.0625, %v202_v39  ;;  %v751_v40 = vsel %vm725_vm4, %v576_v19, %v750_v37  ;;  %v744_v51 = vsel %vm725_vm4, %v544_v24, %v743_v44 }
  0xc5   :  { %v580_v25 = vrot.slane %v361_v47, %v1340_v48  ;;  %v548_v28 = vrot.slane %v353_v61, %v1340_v48 }
  0xc6   :  { %v229_v62 = vpop.xlane.xlu1 %228  ;;  %v205_v63 = vpop.xlane.xlu0 %204 }
  0xc7   :  { %v362_v11 = vmul.f32 0.0625, %v229_v62  ;;  %v354_v6 = vmul.f32 0.0625, %v205_v63  ;;  %v752_v1 = vsel %vm727_vm5, %v580_v25, %v751_v40  ;;  %v745_v2 = vsel %vm727_vm5, %v548_v28, %v744_v51 }
  0xc9   :  { %v584_v35 = vrot.slane %v362_v11, %v1340_v48  ;;  %v552_v36 = vrot.slane %v354_v6, %v1340_v48 }
  0xca   :  { %v1372_v49 = vpop.xlane.xlu1 %240  ;;  %v1374_v22 = vpop.xlane.xlu0 %237 }
  0xcb   :  { %v753_v3 = vsel %vm729_vm6, %v584_v35, %v752_v1  ;;  %v746_v8 = vsel %vm729_vm6, %v552_v36, %v745_v2  ;;  %v366_v55 = vmul.f32 0.0625, %v1372_v49  ;;  %v365_v50 = vmul.f32 0.0625, %v1374_v22 }
  0xcd   :  { %v600_v52 = vrot.slane %v366_v55, %v1340_v48  ;;  %v596_v53 = vrot.slane %v365_v50, %v1340_v48 }
  0xce   :  { %v1376_v23 = vpop.xlane.xlu1 %264  ;;  %v1378_v30 = vpop.xlane.xlu0 %261 }
  0xcf   :  { %v756_v29 = vsel %vm721_vm2, %v600_v52, %v596_v53 }
  0xd2   :  { %v232_v41 = vpop.xlane.xlu1 %231  ;;  %v208_v4 = vpop.xlane.xlu0 %207 }
  0xd3   :  { %v363_v13 = vmul.f32 0.0625, %v232_v41  ;;  %v355_v16 = vmul.f32 0.0625, %v208_v4  ;;  %v374_v41 = vmul.f32 0.0625, %v1376_v23  ;;  %v373_v4 = vmul.f32 0.0625, %v1378_v30 }
  0xd5   :  { %v588_v45 = vrot.slane %v363_v13, %v1340_v48  ;;  %v556_v56 = vrot.slane %v355_v16, %v1340_v48  ;;  %v632_v49 = vrot.slane %v374_v41, %v1340_v48  ;;  %v628_v22 = vrot.slane %v373_v4, %v1340_v48 }
  0xd6   :  { %v268_v17 = vpop.xlane.xlu1 %267  ;;  %v244_v18 = vpop.xlane.xlu0 %243 }
  0xd7   :  { %v754_v15 = vsel %vm731_vm7, %v588_v45, %v753_v3  ;;  %v747_v20 = vsel %vm731_vm7, %v556_v56, %v746_v8  ;;  %v375_v5 = vmul.f32 0.0625, %v268_v17  ;;  %v367_v46 = vmul.f32 0.0625, %v244_v18 }
  0xd8   :  { %v763_v34 = vsel %vm721_vm2, %v632_v49, %v628_v22 }
  0xd9   :  { %v636_v30 = vrot.slane %v375_v5, %v1340_v48  ;;  %v604_v12 = vrot.slane %v367_v46, %v1340_v48 }
  0xda   :  { %v235_v57 = vpop.xlane.xlu1 %234  ;;  %v211_v58 = vpop.xlane.xlu0 %210 }
  0xdb   :  { %v364_v59 = vmul.f32 0.0625, %v235_v57  ;;  %v356_v0 = vmul.f32 0.0625, %v211_v58  ;;  %v764_v37 = vsel %vm723_vm3, %v636_v30, %v763_v34  ;;  %v757_v44 = vsel %vm723_vm3, %v604_v12, %v756_v29 }
  0xdd   :  { %v592_v9 = vrot.slane %v364_v59, %v1340_v48  ;;  %v560_v14 = vrot.slane %v356_v0, %v1340_v48 }
  0xde   :  { %v271_v21 = vpop.xlane.xlu1 %270  ;;  %v247_v26 = vpop.xlane.xlu0 %246 }
  0xdf   :  { %v748_v27 = vsel %vm733_vm8, %v560_v14, %v747_v20  ;;  %v755_v32 = vsel %vm733_vm8, %v592_v9, %v754_v15  ;;  %v376_v47 = vmul.f32 0.0625, %v271_v21  ;;  %v368_v61 = vmul.f32 0.0625, %v247_v26 }
  0xe0   :  { %v917_v33 = vpack.c.bf16 %v755_v32, %v748_v27 }
  0xe1   :  { %v640_v19 = vrot.slane %v376_v47, %v1340_v48  ;;  %v608_v24 = vrot.slane %v368_v61, %v1340_v48 }
  0xe2   :  { %v274_v38 = vpop.xlane.xlu1 %273  ;;  %918 = vmatprep.subr.bf16.mxu0 %v917_v33  ;;  %v250_v39 = vpop.xlane.xlu0 %249 }
  0xe3   :  { %920 = vmatpush3.bf16.msra.mxu0 %v917_v33  ;;  %v377_v11 = vmul.f32 0.0625, %v274_v38  ;;  %v369_v6 = vmul.f32 0.0625, %v250_v39  ;;  %v765_v40 = vsel %vm725_vm4, %v640_v19, %v764_v37  ;;  %v758_v51 = vsel %vm725_vm4, %v608_v24, %v757_v44 }
  0xe5   :  { %v644_v25 = vrot.slane %v377_v11, %v1340_v48  ;;  %v612_v28 = vrot.slane %v369_v6, %v1340_v48 }
  0xe6   :  { %v277_v62 = vpop.xlane.xlu1 %276  ;;  %v253_v63 = vpop.xlane.xlu0 %252 }
  0xe7   :  { %v378_v7 = vmul.f32 0.0625, %v277_v62  ;;  %v370_v23 = vmul.f32 0.0625, %v253_v63  ;;  %v766_v1 = vsel %vm727_vm5, %v644_v25, %v765_v40  ;;  %v759_v2 = vsel %vm727_vm5, %v612_v28, %v758_v51 }
  0xe9   :  { %v648_v35 = vrot.slane %v378_v7, %v1340_v48  ;;  %v616_v36 = vrot.slane %v370_v23, %v1340_v48 }
  0xea   :  { %v289_v31 = vpop.xlane.xlu1 %288  ;;  %v286_v42 = vpop.xlane.xlu0 %285 }
  0xeb   :  { %v767_v3 = vsel %vm729_vm6, %v648_v35, %v766_v1  ;;  %v760_v8 = vsel %vm729_vm6, %v616_v36, %v759_v2  ;;  %v382_v62 = vmul.f32 0.0625, %v289_v31  ;;  %v381_v63 = vmul.f32 0.0625, %v286_v42 }
  0xed   :  { %v664_v47 = vrot.slane %v382_v62, %v1340_v48  ;;  %v660_v61 = vrot.slane %v381_v63, %v1340_v48 }
  0xee   :  { %v313_v43 = vpop.xlane.xlu1 %312  ;;  %v310_v54 = vpop.xlane.xlu0 %309 }
  0xef   :  { %v390_v55 = vmul.f32 0.0625, %v313_v43  ;;  %v389_v50 = vmul.f32 0.0625, %v310_v54 }
  0xf1   :  { %v696_v11 = vrot.slane %v390_v55, %v1340_v48  ;;  %v692_v6 = vrot.slane %v389_v50, %v1340_v48 }
  0xf2   :  { %v280_v60 = vpop.xlane.xlu1 %279  ;;  %v256_v10 = vpop.xlane.xlu0 %255 }
  0xf3   :  { %v379_v13 = vmul.f32 0.0625, %v280_v60  ;;  %v371_v16 = vmul.f32 0.0625, %v256_v10 }
  0xf5   :  { %v652_v45 = vrot.slane %v379_v13, %v1340_v48  ;;  %v620_v56 = vrot.slane %v371_v16, %v1340_v48 }
  0xf6   :  { %v316_v17 = vpop.xlane.xlu1 %315  ;;  %v292_v18 = vpop.xlane.xlu0 %291 }
  0xf7   :  { %v768_v15 = vsel %vm731_vm7, %v652_v45, %v767_v3  ;;  %v761_v20 = vsel %vm731_vm7, %v620_v56, %v760_v8  ;;  %v391_v41 = vmul.f32 0.0625, %v316_v17  ;;  %v383_v4 = vmul.f32 0.0625, %v292_v18 }
  0xf8   :  { %v770_v17 = vsel %vm721_vm2, %v664_v47, %v660_v61  ;;  %v777_v18 = vsel %vm721_vm2, %v696_v11, %v692_v6 }
  0xf9   :  { %v700_v43 = vrot.slane %v391_v41, %v1340_v48  ;;  %v668_v54 = vrot.slane %v383_v4, %v1340_v48 }
  0xfa   :  { %v283_v57 = vpop.xlane.xlu1 %282  ;;  %v259_v58 = vpop.xlane.xlu0 %258 }
  0xfb   :  { %v380_v59 = vmul.f32 0.0625, %v283_v57  ;;  %v372_v0 = vmul.f32 0.0625, %v259_v58  ;;  %v778_v25 = vsel %vm723_vm3, %v700_v43, %v777_v18  ;;  %v771_v28 = vsel %vm723_vm3, %v668_v54, %v770_v17 }
  0xfd   :  { %v656_v9 = vrot.slane %v380_v59, %v1340_v48  ;;  %v624_v14 = vrot.slane %v372_v0, %v1340_v48 }
  0xfe   :  { %v319_v21 = vpop.xlane.xlu1 %318  ;;  %v295_v26 = vpop.xlane.xlu0 %294 }
  0xff   :  { %v762_v27 = vsel %vm733_vm8, %v624_v14, %v761_v20  ;;  %v769_v32 = vsel %vm733_vm8, %v656_v9, %v768_v15  ;;  %v392_v60 = vmul.f32 0.0625, %v319_v21  ;;  %v384_v10 = vmul.f32 0.0625, %v295_v26  ;;  %v398_v14 = vld [vmem:[%s1489_s1 + $0x8] sm:$0x3] }
 0x100   :  { %v921_v33 = vpack.c.bf16 %v769_v32, %v762_v27 }
 0x101   :  { %v704_v7 = vrot.slane %v392_v60, %v1340_v48  ;;  %v672_v23 = vrot.slane %v384_v10, %v1340_v48 }
 0x102   :  { %v322_v38 = vpop.xlane.xlu1 %321  ;;  %922 = vmatprep.subr.bf16.mxu0 %v921_v33  ;;  %v298_v39 = vpop.xlane.xlu0 %297 }
 0x103   :  { %924 = vmatpush3.bf16.msra.mxu0 %v921_v33  ;;  %v393_v52 = vmul.f32 0.0625, %v322_v38  ;;  %v385_v53 = vmul.f32 0.0625, %v298_v39  ;;  %v779_v37 = vsel %vm725_vm4, %v704_v7, %v778_v25  ;;  %v772_v44 = vsel %vm725_vm4, %v672_v23, %v771_v28 }
 0x105   :  { %v708_v13 = vrot.slane %v393_v52, %v1340_v48  ;;  %v676_v16 = vrot.slane %v385_v53, %v1340_v48 }
 0x106   :  { %v325_v5 = vpop.xlane.xlu1 %324  ;;  %v301_v46 = vpop.xlane.xlu0 %300 }
 0x107   :  { %v394_v31 = vmul.f32 0.0625, %v325_v5  ;;  %v386_v42 = vmul.f32 0.0625, %v301_v46  ;;  %v780_v57 = vsel %vm727_vm5, %v708_v13, %v779_v37  ;;  %v773_v58 = vsel %vm727_vm5, %v676_v16, %v772_v44 }
 0x109   :  { %v712_v19 = vrot.slane %v394_v31, %v1340_v48  ;;  %v680_v24 = vrot.slane %v386_v42, %v1340_v48 }
 0x10a   :  { %v328_v49 = vpop.xlane.xlu1 %327  ;;  %v304_v22 = vpop.xlane.xlu0 %303 }
 0x10b   :  { %v395_v30 = vmul.f32 0.0625, %v328_v49  ;;  %v387_v12 = vmul.f32 0.0625, %v304_v22  ;;  %v781_v40 = vsel %vm729_vm6, %v712_v19, %v780_v57  ;;  %v774_v51 = vsel %vm729_vm6, %v680_v24, %v773_v58 }
 0x10d   :  { %v716_v29 = vrot.slane %v395_v30, %v1340_v48  ;;  %v684_v34 = vrot.slane %v387_v12, %v1340_v48 }
 0x10e   :  { %v331_v35 = vpop.xlane.xlu1 %330  ;;  %v307_v36 = vpop.xlane.xlu0 %306 }
 0x10f   :  { %v396_v45 = vmul.f32 0.0625, %v331_v35  ;;  %v388_v56 = vmul.f32 0.0625, %v307_v36  ;;  %v782_v1 = vsel %vm731_vm7, %v716_v29, %v781_v40  ;;  %v775_v2 = vsel %vm731_vm7, %v684_v34, %v774_v51 }
 0x111   :  { %v720_v59 = vrot.slane %v396_v45, %v1340_v48  ;;  %v688_v0 = vrot.slane %v388_v56, %v1340_v48 }
 0x113   :  { %v776_v3 = vsel %vm733_vm8, %v688_v0, %v775_v2  ;;  %v783_v8 = vsel %vm733_vm8, %v720_v59, %v782_v1 }
 0x114   :  { %v925_v9 = vpack.c.bf16 %v783_v8, %v776_v3 }
 0x116   :  { %926 = vmatprep.subr.bf16.mxu0 %v925_v9 }
 0x117   :  { %928 = vmatpush3.bf16.msra.mxu0 %v925_v9 }
 0x11a   :  { %911 = vmatmul.mubr.msk.f32.vlgmr.msra.gmra.mrb[0].mxu0 %vm792_vm1, %v398_v14 }
 0x1ed   :  { %v912_v48 = vpop.f32.mrb[0].mxu0 }
 0x1ee   :  { %877 = vst.msk [vmem:[%s1490_s2 + $0x8] sm:$0x3] %vm876_vm9, %v912_v48  ;;  %v865_v15 = vpop.f32.mrb[1].mxu0 }
 0x1ef   :  { %875 = vst.msk [vmem:[%s1490_s2] sm:$0xff] %vm874_vm10, %v865_v15 }

</bundles_post_ra>
